<compile_context>
chip_gen: v7x
topology: tpu7x:2x2x1
jax: 0.10.0
libtpu: 0.0.40
codegen_flags: <defaults>
</compile_context>

<pallas_src>
import functools

import jax
import jax.numpy as jnp
from jax import lax
from jax.experimental import pallas as pl
from jax.experimental.pallas import tpu as pltpu


EPS = 5e-5  # F.normalize(p=2, eps=5e-5) of the reference module


# --------------------------------------------------------------------------- tiling helpers
def _pick_tile(total, cap):
    """Largest divisor of `total` <= cap (prefer multiples of 8).

    Never exceeds `cap` when total > cap (guards against accidental
    whole-array blocks / VMEM OOM)."""
    if total <= cap:
        return total
    fallback = 1
    for d in range(cap, 0, -1):
        if total % d == 0:
            if d % 8 == 0:
                return d
            if fallback == 1:
                fallback = d
    return fallback


def _pick_lane_tile(total, cap):
    """Largest divisor of `total` that is a multiple of 128 and <= cap.

    Falls back to the full dim (required for lane-tiling legality) if no such
    divisor exists."""
    if total <= cap:
        return total
    d = (cap // 128) * 128
    while d >= 128:
        if total % d == 0:
            return d
        d -= 128
    return total


# --------------------------------------------------------------------------- embed kernel
def nlsa_embed_pallas(params, x):
    """Fused conv_match (3x3), key L2 normalization and conv_assembly (1x1).

    x: (N, Cin, H, W).  Returns
      x_embed (N, L, Ce) raw conv_match output (queries / LSH input)
      x_norm  (N, L, Ce) L2-normalized conv_match output (keys)
      y_embed (N, L, Cr) conv_assembly output (values)
    """
    N, Cin, H, W = x.shape
    Ce = params["w_match"].shape[0]
    Cr = params["w_assembly"].shape[0]
    L = H * W

    # NHWC, spatially padded by 1 for the 3x3 conv.
    xp = jnp.pad(jnp.transpose(x, (0, 2, 3, 1)), ((0, 0), (1, 1), (1, 1), (0, 0)))
    w3 = jnp.transpose(params["w_match"], (2, 3, 1, 0))      # (3, 3, Cin, Ce)
    b3 = params["b_match"].reshape(1, Ce)
    w1 = jnp.transpose(params["w_assembly"][:, :, 0, 0])     # (Cin, Cr)
    b1 = params["b_assembly"].reshape(1, Cr)

    def kernel(xp_ref, w3_ref, b3_ref, w1_ref, b1_ref, xe_ref, xn_ref, ye_ref):
        xpv = xp_ref[...]                                    # (H+2, W+2, Cin)
        w3v = w3_ref[...]                                    # (3, 3, Cin, Ce)
        acc = jnp.zeros((L, Ce), jnp.float32)
        # 3x3 conv as 9 shifted matmuls -- no im2col tensor ever hits HBM.
        for ky in range(3):
            for kx in range(3):
                patch = xpv[ky:ky + H, kx:kx + W, :].reshape(L, Cin)
                acc = acc + jnp.dot(patch, w3v[ky, kx],
                                    preferred_element_type=jnp.float32)
        xe = acc + b3_ref[...]
        xe_ref[...] = xe
        # normalize keys exactly once (rsqrt -> EUP); reused by every window.
        ss = jnp.sum(xe * xe, axis=-1, keepdims=True)
        xn_ref[...] = xe * lax.rsqrt(jnp.maximum(ss, EPS * EPS))
        # 1x1 conv_assembly from the same resident input block.
        center = xpv[1:1 + H, 1:1 + W, :].reshape(L, Cin)
        ye_ref[...] = (jnp.dot(center, w1_ref[...],
                               preferred_element_type=jnp.float32) + b1_ref[...])

    # NOTE: grid is over N; per-image blocks easily fit VMEM at these sizes.
    return pl.pallas_call(
        kernel,
        out_shape=(
            jax.ShapeDtypeStruct((N, L, Ce), jnp.float32),
            jax.ShapeDtypeStruct((N, L, Ce), jnp.float32),
            jax.ShapeDtypeStruct((N, L, Cr), jnp.float32),
        ),
        grid=(N,),
        in_specs=[
            pl.BlockSpec((pl.Squeezed(), H + 2, W + 2, Cin), lambda n: (n, 0, 0, 0)),
            pl.BlockSpec((3, 3, Cin, Ce), lambda n: (0, 0, 0, 0)),
            pl.BlockSpec((1, Ce), lambda n: (0, 0)),
            pl.BlockSpec((Cin, Cr), lambda n: (0, 0)),
            pl.BlockSpec((1, Cr), lambda n: (0, 0)),
        ],
        out_specs=(
            pl.BlockSpec((pl.Squeezed(), L, Ce), lambda n: (n, 0, 0)),
            pl.BlockSpec((pl.Squeezed(), L, Ce), lambda n: (n, 0, 0)),
            pl.BlockSpec((pl.Squeezed(), L, Cr), lambda n: (n, 0, 0)),
        ),
        compiler_params=pltpu.CompilerParams(dimension_semantics=("parallel",)),
    )(xp, w3, b3, w1, b1)


def nlsa_embed_reference(params, x):
    """Pure-XLA reference for the two convolutions."""
    dn = ("NCHW", "OIHW", "NCHW")
    xm = lax.conv_general_dilated(x, params["w_match"], (1, 1), "SAME",
                                  dimension_numbers=dn)
    xm = xm + params["b_match"][None, :, None, None]
    ya = lax.conv_general_dilated(x, params["w_assembly"], (1, 1), "SAME",
                                  dimension_numbers=dn)
    ya = ya + params["b_assembly"][None, :, None, None]
    N, Ce, H, W = xm.shape
    x_embed = xm.reshape(N, Ce, H * W).transpose(0, 2, 1)
    y_embed = ya.reshape(N, -1, H * W).transpose(0, 2, 1)
    return x_embed, y_embed


# --------------------------------------------------------------------------- chunk attention
def _attn_kernel(xq_ref, xkc_ref, xkp_ref, xkn_ref, yvc_ref, yvp_ref, yvn_ref,
                 ret_ref, lse_ref):
    q = xq_ref[...]                                                  # (tg, ck, Ce)
    k = jnp.concatenate([xkc_ref[...], xkp_ref[...], xkn_ref[...]], axis=1)
    v = jnp.concatenate([yvc_ref[...], yvp_ref[...], yvn_ref[...]], axis=1)
    raw = jnp.einsum("gie,gje->gij", q, k, preferred_element_type=jnp.float32)
    m = jnp.max(raw, axis=-1, keepdims=True)
    e = jnp.exp(raw - m)
    s = jnp.sum(e, axis=-1, keepdims=True)
    lse_ref[...] = (m[..., 0] + jnp.log(s[..., 0]))[:, None, :]      # (tg, 1, ck)
    p = e * pl.reciprocal(s, approx=True)                            # EUP
    ret_ref[...] = jnp.einsum("gij,gje->gie", p, v,
                              preferred_element_type=jnp.float32)


def chunk_attention(xq, xk, yv, *, tg_cap=128):
    """Bucketed attention; adjacency resolved via index maps (no HBM copies).

    xq (G, nck, ck, Ce) raw queries, xk (G, nck, ck, Ce) normalized keys,
    yv (G, nck, ck, Cr) values -> ret (G, nck, ck, Cr), lse (G, nck, 1, ck).
    """
    G, nck, ck, Ce = xq.shape
    Cr = yv.shape[-1]
    tg = _pick_tile(G, tg_cap)

    def spec(feat, off):
        return pl.BlockSpec(
            (tg, pl.Squeezed(), ck, feat),
            lambda g, j, off=off: (g, (j + off) % nck, 0, 0))

    return pl.pallas_call(
        _attn_kernel,
        out_shape=(
            jax.ShapeDtypeStruct((G, nck, ck, Cr), jnp.float32),
            jax.ShapeDtypeStruct((G, nck, 1, ck), jnp.float32),
        ),
        grid=(G // tg, nck),
        in_specs=[
            spec(Ce, 0),                                 # queries (current bucket)
            spec(Ce, 0), spec(Ce, -1), spec(Ce, 1),      # keys: cur, prev, next
            spec(Cr, 0), spec(Cr, -1), spec(Cr, 1),      # values: cur, prev, next
        ],
        out_specs=(
            pl.BlockSpec((tg, pl.Squeezed(), ck, Cr), lambda g, j: (g, j, 0, 0)),
            pl.BlockSpec((tg, pl.Squeezed(), 1, ck), lambda g, j: (g, j, 0, 0)),
        ),
        compiler_params=pltpu.CompilerParams(
            dimension_semantics=("parallel", "parallel")),
    )(xq, xk, xk, xk, yv, yv, yv)


# --------------------------------------------------------------------------- fused tail
def combine_residual(r, s, x_res, res_scale, *, tl_cap=512):
    """softmax over hash rounds + weighted sum + res_scale + residual + layout.

    r (N, L, nh, Cr), s (N, L, nh), x_res (N, Cr, L) -> out (N, Cr, L)
    (output block is lane-dense: last dim is an L tile, multiple of 128.)
    """
    N, L, nh, Cr = r.shape
    tl = _pick_lane_tile(L, tl_cap)

    def kernel(r_ref, s_ref, x_ref, o_ref):
        rr = r_ref[...]                                              # (tl, nh, Cr)
        ss = s_ref[...]                                              # (tl, nh)
        m = jnp.max(ss, axis=-1, keepdims=True)
        e = jnp.exp(ss - m)
        p = e * pl.reciprocal(jnp.sum(e, axis=-1, keepdims=True), approx=True)
        comb = jnp.sum(rr * p[:, :, None], axis=1)                   # (tl, Cr)
        o_ref[...] = comb.T * res_scale + x_ref[...]                 # (Cr, tl)

    return pl.pallas_call(
        kernel,
        out_shape=jax.ShapeDtypeStruct((N, Cr, L), jnp.float32),
        grid=(N, L // tl),
        in_specs=[
            pl.BlockSpec((pl.Squeezed(), tl, nh, Cr), lambda n, l: (n, l, 0, 0)),
            pl.BlockSpec((pl.Squeezed(), tl, nh), lambda n, l: (n, l, 0)),
            pl.BlockSpec((pl.Squeezed(), Cr, tl), lambda n, l: (n, 0, l)),
        ],
        out_specs=pl.BlockSpec((pl.Squeezed(), Cr, tl), lambda n, l: (n, 0, l)),
        compiler_params=pltpu.CompilerParams(
            dimension_semantics=("parallel", "parallel")),
    )(r, s, x_res)


# --------------------------------------------------------------------------- model glue
def init_params(key, channels=32, reduction=4):
    k1, k2, k3, k4 = jax.random.split(key, 4)
    ce = channels // reduction
    return dict(
        w_match=0.05 * jax.random.normal(k1, (ce, channels, 3, 3), jnp.float32),
        b_match=0.05 * jax.random.normal(k2, (ce,), jnp.float32),
        w_assembly=0.05 * jax.random.normal(k3, (channels, channels, 1, 1), jnp.float32),
        b_assembly=0.05 * jax.random.normal(k4, (channels,), jnp.float32),
    )


def nlsa_attend(x_embed, x_norm, y_embed, x, key, *, n_hashes=4, chunk_size=16,
                res_scale=1.0, use_pallas=True):
    N, Cin, H, W = x.shape
    L = H * W
    Ce = x_embed.shape[-1]
    Cr = y_embed.shape[-1]
    assert Cr == Cin, "residual add requires conv_assembly channels == input channels"

    # ---- LSH hashing (XLA glue) ----
    hash_buckets = min(L // chunk_size + (L // chunk_size) % 2, 128)
    rot = jax.random.normal(key, (Ce, n_hashes, hash_buckets // 2), jnp.float32)
    rotated = jnp.einsum("btf,fhi->bhti", x_embed, rot)
    rotated = jnp.concatenate([rotated, -rotated], axis=-1)
    hash_codes = jnp.argmax(rotated, axis=-1)                        # (N, nh, L)
    offsets = (jnp.arange(n_hashes) * hash_buckets).reshape(1, -1, 1)
    hash_codes = (hash_codes + offsets).reshape(N, -1)

    # TODO(synk): argsort + batched gather / undo-sort stay in XLA (no clean
    # Pallas TPU equivalent for a data-dependent full sort).
    indices = jnp.argsort(hash_codes, axis=-1)
    undo_sort = jnp.argsort(indices, axis=-1)
    mod_indices = indices % L
    xq_s = jnp.take_along_axis(x_embed, mod_indices[..., None], axis=1)
    xk_s = jnp.take_along_axis(x_norm, mod_indices[..., None], axis=1)
    yv_s = jnp.take_along_axis(y_embed, mod_indices[..., None], axis=1)

    # ---- bucketize (G = N*n_hashes groups of nck chunks) ----
    padding = (chunk_size - L % chunk_size) % chunk_size

    def bucketize(t, C):
        t = t.reshape(N, n_hashes, L, C)
        if padding:
            t = jnp.concatenate([t, t[:, :, L - padding:, :]], axis=2)
        return t.reshape(N * n_hashes, -1, chunk_size, C)

    xq_b = bucketize(xq_s, Ce)
    xk_b = bucketize(xk_s, Ce)
    yv_b = bucketize(yv_s, Cr)
    nck = xq_b.shape[1]

    if use_pallas:
        ret, lse = chunk_attention(xq_b, xk_b, yv_b)
        bucket_score = lse[:, :, 0, :]                               # (G, nck, ck)
    else:
        # reference math: normalize keys after bucketing (as the PyTorch module),
        # adjacency via roll/concat, exact softmax.
        nrm = jnp.sqrt(jnp.sum(xq_b * xq_b, axis=-1, keepdims=True))
        kk = xq_b / jnp.maximum(nrm, EPS)
        k = jnp.concatenate([kk, jnp.roll(kk, 1, axis=1), jnp.roll(kk, -1, axis=1)], axis=2)
        v = jnp.concatenate([yv_b, jnp.roll(yv_b, 1, axis=1), jnp.roll(yv_b, -1, axis=1)], axis=2)
        raw = jnp.einsum("gkie,gkje->gkij", xq_b, k)
        lse = jax.scipy.special.logsumexp(raw, axis=-1, keepdims=True)
        ret = jnp.einsum("gkij,gkje->gkie", jnp.exp(raw - lse), v)
        bucket_score = lse[..., 0]

    ret = ret.reshape(N, n_hashes, nck * chunk_size, Cr)
    bucket_score = bucket_score.reshape(N, n_hashes, nck * chunk_size)
    if padding:
        ret = ret[:, :, :-padding, :]
        bucket_score = bucket_score[:, :, :-padding]

    # ---- undo sort (XLA gather) ----
    ret = ret.reshape(N, n_hashes * L, Cr)
    bucket_score = bucket_score.reshape(N, n_hashes * L)
    ret = jnp.take_along_axis(ret, undo_sort[..., None], axis=1)
    bucket_score = jnp.take_along_axis(bucket_score, undo_sort, axis=1)
    r_c = ret.reshape(N, n_hashes, L, Cr).transpose(0, 2, 1, 3)      # (N, L, nh, Cr)
    s_c = bucket_score.reshape(N, n_hashes, L).transpose(0, 2, 1)    # (N, L, nh)

    # ---- softmax over hash rounds + weighted sum + residual + layout ----
    if use_pallas:
        out = combine_residual(r_c, s_c, x.reshape(N, Cin, L), res_scale)
    else:
        p = jax.nn.softmax(s_c, axis=-1)[..., None]
        comb = jnp.sum(r_c * p, axis=2)                              # (N, L, Cr)
        out = comb.transpose(0, 2, 1).reshape(N, Cr, L) * res_scale + x.reshape(N, Cin, L)
    return out.reshape(N, Cr, H, W)


def nlsa_forward(params, x, key, *, n_hashes=4, chunk_size=16, res_scale=1.0,
                 use_pallas=True):
    if use_pallas:
        xe, xn, ye = nlsa_embed_pallas(params, x)
    else:
        xe, ye = nlsa_embed_reference(params, x)
        ss = jnp.sum(xe * xe, axis=-1, keepdims=True)
        xn = xe * lax.rsqrt(jnp.maximum(ss, EPS * EPS))
    return nlsa_attend(xe, xn, ye, x, key, n_hashes=n_hashes, chunk_size=chunk_size,
                       res_scale=res_scale, use_pallas=use_pallas)


# --------------------------------------------------------------------------- main
if __name__ == "__main__":
    key = jax.random.PRNGKey(0)
    pkey, xkey, rkey = jax.random.split(key, 3)

    channels, reduction, n_hashes, chunk_size = 32, 4, 4, 16
    params = init_params(pkey, channels=channels, reduction=reduction)
    x = jax.random.normal(xkey, (2, channels, 16, 16), jnp.float32)

    # --- embed stage: Pallas fused kernel vs lax.conv reference ---
    xe_p, xn_p, ye_p = jax.block_until_ready(nlsa_embed_pallas(params, x))
    xe_r, ye_r = nlsa_embed_reference(params, x)
    assert jnp.allclose(xe_p, xe_r, rtol=1e-2, atol=1e-2), float(jnp.max(jnp.abs(xe_p - xe_r)))
    assert jnp.allclose(ye_p, ye_r, rtol=1e-2, atol=1e-2), float(jnp.max(jnp.abs(ye_p - ye_r)))
    nrm = jnp.sqrt(jnp.sum(xe_p * xe_p, -1, keepdims=True))
    xn_ref = xe_p / jnp.maximum(nrm, EPS)
    assert jnp.allclose(xn_p, xn_ref, rtol=1e-2, atol=1e-2), float(jnp.max(jnp.abs(xn_p - xn_ref)))

    # --- attention + tail: Pallas path vs pure-JAX reference on the same
    #     embeddings (identical LSH routing by construction) ---
    attend_p = jax.jit(functools.partial(nlsa_attend, n_hashes=n_hashes,
                                         chunk_size=chunk_size, res_scale=1.0,
                                         use_pallas=True))
    attend_r = functools.partial(nlsa_attend, n_hashes=n_hashes,
                                 chunk_size=chunk_size, res_scale=1.0,
                                 use_pallas=False)
    out = jax.block_until_ready(attend_p(xe_p, xn_p, ye_p, x, rkey))
    ref = attend_r(xe_p, xn_p, ye_p, x, rkey)
    assert jnp.allclose(out, ref, rtol=1e-2, atol=1e-2), float(jnp.max(jnp.abs(out - ref)))

    # --- exercise the full jitted Pallas forward once end-to-end ---
    full = jax.jit(functools.partial(nlsa_forward, n_hashes=n_hashes,
                                     chunk_size=chunk_size, use_pallas=True))
    jax.block_until_ready(full(params, x, rkey))

    print("KERNEL_OK")
</pallas_src>

<mosaic_0001>
module attributes {stable_mosaic.version = 11 : i64} {
  func.func @kernel(%arg0: i32, %arg1: memref<1x18x18x32xf32, #tpu.memory_space<vmem>>, %arg2: memref<3x3x32x8xf32, #tpu.memory_space<vmem>>, %arg3: memref<1x8xf32, #tpu.memory_space<vmem>>, %arg4: memref<32x32xf32, #tpu.memory_space<vmem>>, %arg5: memref<1x32xf32, #tpu.memory_space<vmem>>, %arg6: memref<1x256x8xf32, #tpu.memory_space<vmem>>, %arg7: memref<1x256x8xf32, #tpu.memory_space<vmem>>, %arg8: memref<1x256x32xf32, #tpu.memory_space<vmem>>) attributes {dimension_semantics = [#tpu.dimension_semantics<parallel>], iteration_bounds = array<i64: 2>, scalar_prefetch = 0 : i64, scratch_operands = 0 : i64, tpu.core_type = #tpu.core_type<tc>, window_params = [{transform_indices = @transform_0, window_bounds = array<i64: 1, 18, 18, 32>}, {pipeline_mode = #tpu.pipeline_mode<synchronous>, transform_indices = @transform_1, window_bounds = array<i64: 3, 3, 32, 8>}, {pipeline_mode = #tpu.pipeline_mode<synchronous>, transform_indices = @transform_2, window_bounds = array<i64: 1, 8>}, {pipeline_mode = #tpu.pipeline_mode<synchronous>, transform_indices = @transform_3, window_bounds = array<i64: 32, 32>}, {pipeline_mode = #tpu.pipeline_mode<synchronous>, transform_indices = @transform_4, window_bounds = array<i64: 1, 32>}, {transform_indices = @transform_5, window_bounds = array<i64: 1, 256, 8>}, {transform_indices = @transform_6, window_bounds = array<i64: 1, 256, 8>}, {transform_indices = @transform_7, window_bounds = array<i64: 1, 256, 32>}]} {
    %c0 = arith.constant 0 : index
    %c0_0 = arith.constant 0 : index
    %c0_1 = arith.constant 0 : index
    %c0_2 = arith.constant 0 : index
    %0 = vector.load %arg1[%c0, %c0_0, %c0_1, %c0_2] : memref<1x18x18x32xf32, #tpu.memory_space<vmem>>, vector<1x18x18x32xf32>
    %1 = vector.shape_cast %0 : vector<1x18x18x32xf32> to vector<18x18x32xf32>
    %c0_3 = arith.constant 0 : index
    %c0_4 = arith.constant 0 : index
    %c0_5 = arith.constant 0 : index
    %c0_6 = arith.constant 0 : index
    %2 = vector.load %arg2[%c0_3, %c0_4, %c0_5, %c0_6] : memref<3x3x32x8xf32, #tpu.memory_space<vmem>>, vector<3x3x32x8xf32>
    %cst = arith.constant 0.000000e+00 : f32
    %3 = vector.broadcast %cst : f32 to vector<256x8xf32>
    %4 = vector.extract_strided_slice %1 {offsets = [0, 0, 0], sizes = [16, 16, 32], strides = [1, 1, 1]} : vector<18x18x32xf32> to vector<16x16x32xf32>
    %5 = vector.shape_cast %4 : vector<16x16x32xf32> to vector<256x32xf32>
    %6 = vector.extract_strided_slice %2 {offsets = [0, 0, 0, 0], sizes = [1, 1, 32, 8], strides = [1, 1, 1, 1]} : vector<3x3x32x8xf32> to vector<1x1x32x8xf32>
    %7 = vector.shape_cast %6 : vector<1x1x32x8xf32> to vector<32x8xf32>
    %cst_7 = arith.constant dense<0.000000e+00> : vector<256x8xf32>
    %8 = tpu.matmul %5, %7, %cst_7 {dimension_numbers = #tpu.dot_dimension_numbers<[1], [0], [0], [1], [0, 0, 1, 1], [], []>} : vector<256x32xf32>, vector<32x8xf32>, vector<256x8xf32> -> vector<256x8xf32>
    %9 = arith.addf %3, %8 : vector<256x8xf32>
    %10 = vector.extract_strided_slice %1 {offsets = [0, 1, 0], sizes = [16, 16, 32], strides = [1, 1, 1]} : vector<18x18x32xf32> to vector<16x16x32xf32>
    %11 = vector.shape_cast %10 : vector<16x16x32xf32> to vector<256x32xf32>
    %12 = vector.extract_strided_slice %2 {offsets = [0, 1, 0, 0], sizes = [1, 1, 32, 8], strides = [1, 1, 1, 1]} : vector<3x3x32x8xf32> to vector<1x1x32x8xf32>
    %13 = vector.shape_cast %12 : vector<1x1x32x8xf32> to vector<32x8xf32>
    %cst_8 = arith.constant dense<0.000000e+00> : vector<256x8xf32>
    %14 = tpu.matmul %11, %13, %cst_8 {dimension_numbers = #tpu.dot_dimension_numbers<[1], [0], [0], [1], [0, 0, 1, 1], [], []>} : vector<256x32xf32>, vector<32x8xf32>, vector<256x8xf32> -> vector<256x8xf32>
    %15 = arith.addf %9, %14 : vector<256x8xf32>
    %16 = vector.extract_strided_slice %1 {offsets = [0, 2, 0], sizes = [16, 16, 32], strides = [1, 1, 1]} : vector<18x18x32xf32> to vector<16x16x32xf32>
    %17 = vector.shape_cast %16 : vector<16x16x32xf32> to vector<256x32xf32>
    %18 = vector.extract_strided_slice %2 {offsets = [0, 2, 0, 0], sizes = [1, 1, 32, 8], strides = [1, 1, 1, 1]} : vector<3x3x32x8xf32> to vector<1x1x32x8xf32>
    %19 = vector.shape_cast %18 : vector<1x1x32x8xf32> to vector<32x8xf32>
    %cst_9 = arith.constant dense<0.000000e+00> : vector<256x8xf32>
    %20 = tpu.matmul %17, %19, %cst_9 {dimension_numbers = #tpu.dot_dimension_numbers<[1], [0], [0], [1], [0, 0, 1, 1], [], []>} : vector<256x32xf32>, vector<32x8xf32>, vector<256x8xf32> -> vector<256x8xf32>
    %21 = arith.addf %15, %20 : vector<256x8xf32>
    %22 = vector.extract_strided_slice %1 {offsets = [1, 0, 0], sizes = [16, 16, 32], strides = [1, 1, 1]} : vector<18x18x32xf32> to vector<16x16x32xf32>
    %23 = vector.shape_cast %22 : vector<16x16x32xf32> to vector<256x32xf32>
    %24 = vector.extract_strided_slice %2 {offsets = [1, 0, 0, 0], sizes = [1, 1, 32, 8], strides = [1, 1, 1, 1]} : vector<3x3x32x8xf32> to vector<1x1x32x8xf32>
    %25 = vector.shape_cast %24 : vector<1x1x32x8xf32> to vector<32x8xf32>
    %cst_10 = arith.constant dense<0.000000e+00> : vector<256x8xf32>
    %26 = tpu.matmul %23, %25, %cst_10 {dimension_numbers = #tpu.dot_dimension_numbers<[1], [0], [0], [1], [0, 0, 1, 1], [], []>} : vector<256x32xf32>, vector<32x8xf32>, vector<256x8xf32> -> vector<256x8xf32>
    %27 = arith.addf %21, %26 : vector<256x8xf32>
    %28 = vector.extract_strided_slice %1 {offsets = [1, 1, 0], sizes = [16, 16, 32], strides = [1, 1, 1]} : vector<18x18x32xf32> to vector<16x16x32xf32>
    %29 = vector.shape_cast %28 : vector<16x16x32xf32> to vector<256x32xf32>
    %30 = vector.extract_strided_slice %2 {offsets = [1, 1, 0, 0], sizes = [1, 1, 32, 8], strides = [1, 1, 1, 1]} : vector<3x3x32x8xf32> to vector<1x1x32x8xf32>
    %31 = vector.shape_cast %30 : vector<1x1x32x8xf32> to vector<32x8xf32>
    %cst_11 = arith.constant dense<0.000000e+00> : vector<256x8xf32>
    %32 = tpu.matmul %29, %31, %cst_11 {dimension_numbers = #tpu.dot_dimension_numbers<[1], [0], [0], [1], [0, 0, 1, 1], [], []>} : vector<256x32xf32>, vector<32x8xf32>, vector<256x8xf32> -> vector<256x8xf32>
    %33 = arith.addf %27, %32 : vector<256x8xf32>
    %34 = vector.extract_strided_slice %1 {offsets = [1, 2, 0], sizes = [16, 16, 32], strides = [1, 1, 1]} : vector<18x18x32xf32> to vector<16x16x32xf32>
    %35 = vector.shape_cast %34 : vector<16x16x32xf32> to vector<256x32xf32>
    %36 = vector.extract_strided_slice %2 {offsets = [1, 2, 0, 0], sizes = [1, 1, 32, 8], strides = [1, 1, 1, 1]} : vector<3x3x32x8xf32> to vector<1x1x32x8xf32>
    %37 = vector.shape_cast %36 : vector<1x1x32x8xf32> to vector<32x8xf32>
    %cst_12 = arith.constant dense<0.000000e+00> : vector<256x8xf32>
    %38 = tpu.matmul %35, %37, %cst_12 {dimension_numbers = #tpu.dot_dimension_numbers<[1], [0], [0], [1], [0, 0, 1, 1], [], []>} : vector<256x32xf32>, vector<32x8xf32>, vector<256x8xf32> -> vector<256x8xf32>
    %39 = arith.addf %33, %38 : vector<256x8xf32>
    %40 = vector.extract_strided_slice %1 {offsets = [2, 0, 0], sizes = [16, 16, 32], strides = [1, 1, 1]} : vector<18x18x32xf32> to vector<16x16x32xf32>
    %41 = vector.shape_cast %40 : vector<16x16x32xf32> to vector<256x32xf32>
    %42 = vector.extract_strided_slice %2 {offsets = [2, 0, 0, 0], sizes = [1, 1, 32, 8], strides = [1, 1, 1, 1]} : vector<3x3x32x8xf32> to vector<1x1x32x8xf32>
    %43 = vector.shape_cast %42 : vector<1x1x32x8xf32> to vector<32x8xf32>
    %cst_13 = arith.constant dense<0.000000e+00> : vector<256x8xf32>
    %44 = tpu.matmul %41, %43, %cst_13 {dimension_numbers = #tpu.dot_dimension_numbers<[1], [0], [0], [1], [0, 0, 1, 1], [], []>} : vector<256x32xf32>, vector<32x8xf32>, vector<256x8xf32> -> vector<256x8xf32>
    %45 = arith.addf %39, %44 : vector<256x8xf32>
    %46 = vector.extract_strided_slice %1 {offsets = [2, 1, 0], sizes = [16, 16, 32], strides = [1, 1, 1]} : vector<18x18x32xf32> to vector<16x16x32xf32>
    %47 = vector.shape_cast %46 : vector<16x16x32xf32> to vector<256x32xf32>
    %48 = vector.extract_strided_slice %2 {offsets = [2, 1, 0, 0], sizes = [1, 1, 32, 8], strides = [1, 1, 1, 1]} : vector<3x3x32x8xf32> to vector<1x1x32x8xf32>
    %49 = vector.shape_cast %48 : vector<1x1x32x8xf32> to vector<32x8xf32>
    %cst_14 = arith.constant dense<0.000000e+00> : vector<256x8xf32>
    %50 = tpu.matmul %47, %49, %cst_14 {dimension_numbers = #tpu.dot_dimension_numbers<[1], [0], [0], [1], [0, 0, 1, 1], [], []>} : vector<256x32xf32>, vector<32x8xf32>, vector<256x8xf32> -> vector<256x8xf32>
    %51 = arith.addf %45, %50 : vector<256x8xf32>
    %52 = vector.extract_strided_slice %1 {offsets = [2, 2, 0], sizes = [16, 16, 32], strides = [1, 1, 1]} : vector<18x18x32xf32> to vector<16x16x32xf32>
    %53 = vector.shape_cast %52 : vector<16x16x32xf32> to vector<256x32xf32>
    %54 = vector.extract_strided_slice %2 {offsets = [2, 2, 0, 0], sizes = [1, 1, 32, 8], strides = [1, 1, 1, 1]} : vector<3x3x32x8xf32> to vector<1x1x32x8xf32>
    %55 = vector.shape_cast %54 : vector<1x1x32x8xf32> to vector<32x8xf32>
    %cst_15 = arith.constant dense<0.000000e+00> : vector<256x8xf32>
    %56 = tpu.matmul %53, %55, %cst_15 {dimension_numbers = #tpu.dot_dimension_numbers<[1], [0], [0], [1], [0, 0, 1, 1], [], []>} : vector<256x32xf32>, vector<32x8xf32>, vector<256x8xf32> -> vector<256x8xf32>
    %57 = arith.addf %51, %56 : vector<256x8xf32>
    %c0_16 = arith.constant 0 : index
    %c0_17 = arith.constant 0 : index
    %58 = vector.load %arg3[%c0_16, %c0_17] : memref<1x8xf32, #tpu.memory_space<vmem>>, vector<1x8xf32>
    %59 = vector.broadcast %58 : vector<1x8xf32> to vector<256x8xf32>
    %60 = arith.addf %57, %59 : vector<256x8xf32>
    %c0_18 = arith.constant 0 : index
    %c0_19 = arith.constant 0 : index
    %c0_20 = arith.constant 0 : index
    %61 = vector.load %arg6[%c0_18, %c0_19, %c0_20] : memref<1x256x8xf32, #tpu.memory_space<vmem>>, vector<1x256x8xf32>
    %62 = vector.shape_cast %61 : vector<1x256x8xf32> to vector<256x8xf32>
    %63 = vector.shape_cast %60 : vector<256x8xf32> to vector<1x256x8xf32>
    tpu.vector_store %arg6[%c0_18, %c0_19, %c0_20], %63 {strides = array<i32>} : memref<1x256x8xf32, #tpu.memory_space<vmem>>, vector<1x256x8xf32>,
    %64 = arith.mulf %60, %60 : vector<256x8xf32>
    %cst_21 = arith.constant dense<0.000000e+00> : vector<256xf32>
    %65 = vector.multi_reduction <add>, %64, %cst_21 [1] : vector<256x8xf32> to vector<256xf32>
    %66 = vector.shape_cast %65 : vector<256xf32> to vector<256x1xf32>
    %cst_22 = arith.constant 2.500000e-09 : f32
    %67 = vector.broadcast %cst_22 : f32 to vector<256x1xf32>
    %68 = arith.maximumf %66, %67 : vector<256x1xf32>
    %69 = math.rsqrt %68 : vector<256x1xf32>
    %70 = vector.broadcast %69 : vector<256x1xf32> to vector<256x8xf32>
    %71 = arith.mulf %60, %70 : vector<256x8xf32>
    %c0_23 = arith.constant 0 : index
    %c0_24 = arith.constant 0 : index
    %c0_25 = arith.constant 0 : index
    %72 = vector.load %arg7[%c0_23, %c0_24, %c0_25] : memref<1x256x8xf32, #tpu.memory_space<vmem>>, vector<1x256x8xf32>
    %73 = vector.shape_cast %72 : vector<1x256x8xf32> to vector<256x8xf32>
    %74 = vector.shape_cast %71 : vector<256x8xf32> to vector<1x256x8xf32>
    tpu.vector_store %arg7[%c0_23, %c0_24, %c0_25], %74 {strides = array<i32>} : memref<1x256x8xf32, #tpu.memory_space<vmem>>, vector<1x256x8xf32>,
    %75 = vector.extract_strided_slice %1 {offsets = [1, 1, 0], sizes = [16, 16, 32], strides = [1, 1, 1]} : vector<18x18x32xf32> to vector<16x16x32xf32>
    %76 = vector.shape_cast %75 : vector<16x16x32xf32> to vector<256x32xf32>
    %c0_26 = arith.constant 0 : index
    %c0_27 = arith.constant 0 : index
    %77 = vector.load %arg4[%c0_26, %c0_27] : memref<32x32xf32, #tpu.memory_space<vmem>>, vector<32x32xf32>
    %cst_28 = arith.constant dense<0.000000e+00> : vector<256x32xf32>
    %78 = tpu.matmul %76, %77, %cst_28 {dimension_numbers = #tpu.dot_dimension_numbers<[1], [0], [0], [1], [0, 0, 1, 1], [], []>} : vector<256x32xf32>, vector<32x32xf32>, vector<256x32xf32> -> vector<256x32xf32>
    %c0_29 = arith.constant 0 : index
    %c0_30 = arith.constant 0 : index
    %79 = vector.load %arg5[%c0_29, %c0_30] : memref<1x32xf32, #tpu.memory_space<vmem>>, vector<1x32xf32>
    %80 = vector.broadcast %79 : vector<1x32xf32> to vector<256x32xf32>
    %81 = arith.addf %78, %80 : vector<256x32xf32>
    %c0_31 = arith.constant 0 : index
    %c0_32 = arith.constant 0 : index
    %c0_33 = arith.constant 0 : index
    %82 = vector.load %arg8[%c0_31, %c0_32, %c0_33] : memref<1x256x32xf32, #tpu.memory_space<vmem>>, vector<1x256x32xf32>
    %83 = vector.shape_cast %82 : vector<1x256x32xf32> to vector<256x32xf32>
    %84 = vector.shape_cast %81 : vector<256x32xf32> to vector<1x256x32xf32>
    tpu.vector_store %arg8[%c0_31, %c0_32, %c0_33], %84 {strides = array<i32>} : memref<1x256x32xf32, #tpu.memory_space<vmem>>, vector<1x256x32xf32>,
    return
  }
  func.func @transform_0(%arg0: i32) -> (i32, i32, i32, i32) {
    %c0_i32 = arith.constant 0 : i32
    %c0_i32_0 = arith.constant 0 : i32
    %c0_i32_1 = arith.constant 0 : i32
    %c0_i32_2 = arith.constant 0 : i32
    return %arg0, %c0_i32, %c0_i32_0, %c0_i32_1 : i32, i32, i32, i32
  }
  func.func @transform_1(%arg0: i32) -> (i32, i32, i32, i32) {
    %c0_i32 = arith.constant 0 : i32
    %c0_i32_0 = arith.constant 0 : i32
    %c0_i32_1 = arith.constant 0 : i32
    %c0_i32_2 = arith.constant 0 : i32
    %c0_i32_3 = arith.constant 0 : i32
    return %c0_i32, %c0_i32_0, %c0_i32_1, %c0_i32_2 : i32, i32, i32, i32
  }
  func.func @transform_2(%arg0: i32) -> (i32, i32) {
    %c0_i32 = arith.constant 0 : i32
    %c0_i32_0 = arith.constant 0 : i32
    %c0_i32_1 = arith.constant 0 : i32
    return %c0_i32, %c0_i32_0 : i32, i32
  }
  func.func @transform_3(%arg0: i32) -> (i32, i32) {
    %c0_i32 = arith.constant 0 : i32
    %c0_i32_0 = arith.constant 0 : i32
    %c0_i32_1 = arith.constant 0 : i32
    return %c0_i32, %c0_i32_0 : i32, i32
  }
  func.func @transform_4(%arg0: i32) -> (i32, i32) {
    %c0_i32 = arith.constant 0 : i32
    %c0_i32_0 = arith.constant 0 : i32
    %c0_i32_1 = arith.constant 0 : i32
    return %c0_i32, %c0_i32_0 : i32, i32
  }
  func.func @transform_5(%arg0: i32) -> (i32, i32, i32) {
    %c0_i32 = arith.constant 0 : i32
    %c0_i32_0 = arith.constant 0 : i32
    %c0_i32_1 = arith.constant 0 : i32
    return %arg0, %c0_i32, %c0_i32_0 : i32, i32, i32
  }
  func.func @transform_6(%arg0: i32) -> (i32, i32, i32) {
    %c0_i32 = arith.constant 0 : i32
    %c0_i32_0 = arith.constant 0 : i32
    %c0_i32_1 = arith.constant 0 : i32
    return %arg0, %c0_i32, %c0_i32_0 : i32, i32, i32
  }
  func.func @transform_7(%arg0: i32) -> (i32, i32, i32) {
    %c0_i32 = arith.constant 0 : i32
    %c0_i32_0 = arith.constant 0 : i32
    %c0_i32_1 = arith.constant 0 : i32
    return %arg0, %c0_i32, %c0_i32_0 : i32, i32, i32
  }
}

</mosaic_0001>

<bundles_post_ra>
// kernel: tpu_custom_call.1
= control target key start
LH: loop header
LB: loop body
LE: loop exit
PB: predicated region body
PF: predicated region fallthrough
CT: control target
= control target key end

     0   :  { %s5529_s24 = smov 0   ;;  %s7379_s0 = inlined_call_operand.vmem [shape: f32[2,18,18,32], index: 0, kind: input, shape index: {}]   ;;  %s7380_s1 = inlined_call_operand.vmem [shape: f32[3,3,32,8], index: 1, kind: input, shape index: {}]   ;;  %s7381_s2 = inlined_call_operand.vmem [shape: f32[1,8], index: 2, kind: input, shape index: {}]   ;;  %s7382_s3 = inlined_call_operand.vmem [shape: f32[32,32], index: 3, kind: input, shape index: {}]   ;;  %s7383_s4 = inlined_call_operand.vmem [shape: f32[1,32], index: 4, kind: input, shape index: {}]   ;;  %s7384_s5 = inlined_call_operand.vmem [shape: f32[2,256,8], index: 5, kind: output, shape index: {0}]   ;;  %s7385_s6 = inlined_call_operand.vmem [shape: f32[2,256,8], index: 6, kind: output, shape index: {1}]   ;;  %s7386_s7 = inlined_call_operand.vmem [shape: f32[2,256,32], index: 7, kind: output, shape index: {2}]  }
   0x1 LB: > { %s3813_s25 = sadd.s32 4294967295, %s5487_s24   ;;  %p3817_p0 = scmp.ge.s32.totalorder %s5487_s24, 1  ;;  %s5487_s24 = sphi %s5529_s24, %s18_s24  }
   0x2   : > { %p242_p1 = scmp.lt.s32.totalorder %s5487_s24, 3 }
   0x4   : > { %p243_p2 = pnand %p3817_p0, %p242_p1 }
   0x6   : > { %246 = sbr.rel (%p243_p2) target bundleno = 723 (0x2d3), region = 40 }
   0xd   : > { %v374_v0 = vld [vmem:[%s7380_s1 + $0x80] sm:$0xff]  ;;  %v375_v1 = vld [vmem:[%s7380_s1 + $0x88] sm:$0xff]  ;;  %p284_p3 = scmp.lt.s32.totalorder %s3813_s25, 1  ;;  %v376_v5 = vld [vmem:[%s7380_s1 + $0x90] sm:$0xff]  ;;  %vm442_vm0 = vcmask 1046528   ;;  %vm523_vm1 = vcmask 261120  }
   0xe   : > { %v362_v2 = vld [vmem:[%s7380_s1 + $0x20] sm:$0xff]  ;;  %v5104_v3 = vpack.c.bf16 %v375_v1, %v374_v0  ;;  %v363_v4 = vld [vmem:[%s7380_s1 + $0x28] sm:$0xff]  ;;  %v377_v6 = vld [vmem:[%s7380_s1 + $0x98] sm:$0xff]  ;;  %vm1102_vm2 = vcmask 1045504   ;;  %vm3135_vm3 = vcmask 64512  }
   0xf   : > { %v5072_v7 = vpack.c.bf16 %v363_v4, %v362_v2  ;;  %v5108_v8 = vpack.c.bf16 %v377_v6, %v376_v5  ;;  %v364_v9 = vld [vmem:[%s7380_s1 + $0x30] sm:$0xff]  ;;  %v365_v10 = vld [vmem:[%s7380_s1 + $0x38] sm:$0xff]  ;;  %s7595_s25 = smov (!%p284_p3, %s3813_s25), 1  ;;  %v378_v11 = vld [vmem:[%s7380_s1 + $0xa0] sm:$0xff] }
  0x10   : > { %5105 = vmatprep.subr.bf16.mxu0 %v5104_v3  ;;  %v5076_v12 = vpack.c.bf16 %v365_v10, %v364_v9  ;;  %v379_v13 = vld [vmem:[%s7380_s1 + $0xa8] sm:$0xff]  ;;  %s5408_s23 = smul.u32 432, %s7595_s25  ;;  %v358_v14 = vld [vmem:[%s7380_s1] sm:$0xff]  ;;  %v380_v17 = vld [vmem:[%s7380_s1 + $0xb0] sm:$0xff] }
  0x11   : > { %5073 = vmatprep.subr.bf16.mxu1 %v5072_v7  ;;  %5107 = vmatpush3.bf16.msra.mxu0 %v5104_v3  ;;  %v359_v15 = vld [vmem:[%s7380_s1 + $0x8] sm:$0xff]  ;;  %v5112_v16 = vpack.c.bf16 %v379_v13, %v378_v11  ;;  %v381_v18 = vld [vmem:[%s7380_s1 + $0xb8] sm:$0xff]  ;;  %v360_v23 = vld [vmem:[%s7380_s1 + $0x10] sm:$0xff] }
  0x12   : > { %5075 = vmatpush3.bf16.msra.mxu1 %v5072_v7  ;;  %5109 = vmatprep.subr.bf16.mxu0 %v5108_v8  ;;  %s5579_s9 = scalar_lea.vmem %s7379_s0, %s5408_s23  ;;  %v5080_v19 = vpack.c.bf16 %v359_v15, %v358_v14  ;;  %v361_v33 = vld [vmem:[%s7380_s1 + $0x18] sm:$0xff]  ;;  %v5116_v39 = vpack.c.bf16 %v381_v18, %v380_v17  ;;  %v382_v40 = vld [vmem:[%s7380_s1 + $0xc0] sm:$0xff]  ;;  %v383_v54 = vld [vmem:[%s7380_s1 + $0xc8] sm:$0xff] }
  0x13   : > { %5077 = vmatprep.subr.bf16.mxu1 %v5076_v12  ;;  %v5588_v20 = vld [vmem:[%s5579_s9] sm:$0xff]  ;;  %v5591_v21 = vld [vmem:[%s5579_s9 + $0x8] sm:$0xff]  ;;  %v5594_v22 = vld [vmem:[%s5579_s9 + $0x18] sm:$0xff]  ;;  %v5084_v53 = vpack.c.bf16 %v361_v33, %v360_v23  ;;  %v5685_v62 = vpack.c.bf16 %v383_v54, %v382_v40 }
  0x14   : > { %7480 = vst [vmem:[#allocation2_spill] sm:$0xff] %v5588_v20  ;;  %7481 = vst [vmem:[#allocation3_spill] sm:$0xff] %v5594_v22  ;;  %v443_v24 = vrot.slane %v5588_v20, 1  ;;  %v444_v25 = vrot.slane %v5591_v21, 1  ;;  %v5602_v26 = vld [vmem:[%s5579_s9 + $0x20] sm:$0xff]  ;;  %v448_v27 = vrot.slane %v5594_v22, 1 }
  0x15   : > { %5111 = vmatpush3.bf16.msra.mxu0 %v5108_v8  ;;  %7482 = vst [vmem:[#allocation4_spill] sm:$0xff] %v5602_v26  ;;  %v5606_v28 = vld [vmem:[%s5579_s9 + $0x10] sm:$0x3]  ;;  %v449_v29 = vrot.slane %v5602_v26, 1  ;;  %v5611_v31 = vld [vmem:[%s5579_s9 + $0x28] sm:$0x3] }
  0x16   : > { %7483 = vst [vmem:[#allocation5_spill] sm:$0xff] %v5606_v28  ;;  %5079 = vmatpush3.bf16.msra.mxu1 %v5076_v12  ;;  %5113 = vmatprep.subr.bf16.mxu0 %v5112_v16  ;;  %v446_v30 = vrot.slane %v5606_v28, 1  ;;  %v5614_v32 = vld [vmem:[%s5579_s9 + $0x30] sm:$0xff]  ;;  %v445_v34 = vsel %vm442_vm0, %v443_v24, %v444_v25  ;;  %v451_v35 = vrot.slane %v5611_v31, 1  ;;  %v5622_v36 = vld [vmem:[%s5579_s9 + $0x38] sm:$0xff]  ;;  %v5639_v45 = vld [vmem:[%s5579_s9 + $0x48] sm:$0xff] }
  0x17   : > { %v453_v37 = vrot.slane %v5614_v32, 1  ;;  %v5626_v38 = vld [vmem:[%s5579_s9 + $0x40] sm:$0x3]  ;;  %5081 = vmatprep.subr.bf16.mxu1 %v5080_v19  ;;  %4520 = vmatprep.mubr.msk.f32.mxu1 %vm523_vm1, %v445_v34  ;;  %v5633_v41 = vsel %vm442_vm0, %v448_v27, %v449_v29  ;;  %v454_v43 = vrot.slane %v5622_v36, 1  ;;  %v5642_v46 = vld [vmem:[%s5579_s9 + $0x50] sm:$0xff]  ;;  %v458_v49 = vrot.slane %v5639_v45, 1 }
  0x18   : > { %7484 = vst [vmem:[#allocation6_spill] sm:$0xff] %v5633_v41  ;;  %v447_v42 = vsel %vm442_vm0, %v444_v25, %v446_v30  ;;  %v456_v44 = vrot.slane %v5626_v38, 1  ;;  %v5645_v47 = vld [vmem:[%s5579_s9 + $0x58] sm:$0x3]  ;;  %4744 = vmatprep.mubr.msk.f32.mxu0 %vm523_vm1, %v5633_v41  ;;  %v5651_v48 = vsel %vm442_vm0, %v449_v29, %v451_v35  ;;  %v459_v50 = vrot.slane %v5642_v46, 1  ;;  %v5656_v51 = vld [vmem:[%s5579_s9 + $0x60] sm:$0xff] }
  0x19   : > { %4521 = vmatmul.mubr.msk.f32.vlgmr.msra.gmra.mrb[0].mxu1 %vm523_vm1, %v447_v42  ;;  %7485 = vst [vmem:[#allocation7_spill] sm:$0xff] %v5651_v48  ;;  %v5659_v52 = vld [vmem:[%s5579_s9 + $0x68] sm:$0xff]  ;;  %4745 = vmatmul.mubr.msk.f32.vlgmr.msra.gmra.mrb[0].mxu0 %vm523_vm1, %v5651_v48  ;;  %v5669_v55 = vsel %vm442_vm0, %v453_v37, %v454_v43  ;;  %v461_v57 = vrot.slane %v5645_v47, 1  ;;  %v463_v59 = vrot.slane %v5656_v51, 1  ;;  %v5683_v61 = vld [vmem:[%s5579_s9 + $0x70] sm:$0x3] }
  0x1a   : > { %4523 = vmatprep.mubr.msk.f32.mxu1 %vm523_vm1, %v5633_v41  ;;  %7486 = vst [vmem:[#allocation8_spill] sm:$0xff] %v5669_v55  ;;  %5115 = vmatpush3.bf16.msra.mxu0 %v5112_v16  ;;  %v5674_v56 = vsel %vm442_vm0, %v454_v43, %v456_v44  ;;  %v5678_v58 = vsel %vm442_vm0, %v458_v49, %v459_v50  ;;  %v464_v60 = vrot.slane %v5659_v52, 1  ;;  %v5690_v63 = vld [vmem:[%s5579_s9 + $0x78] sm:$0xff]  ;;  %v5693_v0 = vld [vmem:[%s5579_s9 + $0x80] sm:$0xff]  ;;  %v466_v2 = vrot.slane %v5683_v61, 1  ;;  %v5717_v7 = vld [vmem:[%s5579_s9 + $0x90] sm:$0xff] }
  0x1b   : > { %4747 = vmatprep.mubr.msk.f32.mxu0 %vm523_vm1, %v5669_v55  ;;  %7487 = vst [vmem:[#allocation9_spill] sm:$0xff] %v5674_v56  ;;  %7488 = vst [vmem:[#allocation10_spill] sm:$0xff] %v5678_v58  ;;  %5117 = vmatprep.subr.bf16.mxu0 %v5116_v39  ;;  %v5702_v1 = vsel %vm442_vm0, %v459_v50, %v461_v57  ;;  %v468_v4 = vrot.slane %v5690_v63, 1  ;;  %v469_v5 = vrot.slane %v5693_v0, 1  ;;  %v5711_v6 = vld [vmem:[%s5579_s9 + $0x88] sm:$0x3] }
  0x1c   : > { %5083 = vmatpush3.bf16.msra.mxu1 %v5080_v19  ;;  %7489 = vst [vmem:[#allocation11_spill] sm:$0xff] %v5702_v1  ;;  %v5706_v3 = vsel %vm442_vm0, %v463_v59, %v464_v60  ;;  %v5720_v8 = vld [vmem:[%s5579_s9 + $0x98] sm:$0xff]  ;;  %v5729_v9 = vsel %vm442_vm0, %v464_v60, %v466_v2  ;;  %v471_v10 = vrot.slane %v5711_v6, 1  ;;  %v473_v12 = vrot.slane %v5717_v7, 1  ;;  %v5738_v14 = vld [vmem:[%s5579_s9 + $0xa0] sm:$0x3] }
  0x1d   : > { %4524 = vmatmul.mubr.msk.f32.gmra.mrb[2].mxu1 %vm523_vm1, %v5651_v48  ;;  %5085 = vmatprep.subr.bf16.mxu1 %v5084_v53  ;;  %7490 = vst [vmem:[#allocation12_spill] sm:$0xff] %v5706_v3  ;;  %7491 = vst [vmem:[#allocation13_spill] sm:$0xff] %v5729_v9  ;;  %v5733_v11 = vsel %vm442_vm0, %v468_v4, %v469_v5  ;;  %v474_v13 = vrot.slane %v5720_v8, 1  ;;  %v5743_v15 = vld [vmem:[%s5579_s9 + $0xa8] sm:$0xff]  ;;  %v5746_v16 = vld [vmem:[%s5579_s9 + $0xb0] sm:$0xff]  ;;  %v476_v18 = vrot.slane %v5738_v14, 1 }
  0x1e   : > { %4748 = vmatmul.mubr.msk.f32.gmra.mrb[2].mxu0 %vm523_vm1, %v5674_v56  ;;  %4526 = vmatprep.mubr.msk.f32.mxu1 %vm523_vm1, %v5669_v55  ;;  %7492 = vst [vmem:[#allocation14_spill] sm:$0xff] %v5733_v11  ;;  %v5755_v17 = vsel %vm442_vm0, %v469_v5, %v471_v10  ;;  %v478_v23 = vrot.slane %v5743_v15, 1  ;;  %v479_v24 = vrot.slane %v5746_v16, 1  ;;  %v5764_v25 = vld [vmem:[%s5579_s9 + $0xb8] sm:$0x3]  ;;  %v5769_v27 = vld [vmem:[%s5579_s9 + $0xc0] sm:$0xff] }
  0x1f   : > { %4750 = vmatprep.mubr.msk.f32.mxu0 %vm523_vm1, %v5678_v58  ;;  %5119 = vmatpush3.bf16.msra.mxu0 %v5116_v39  ;;  %7493 = vst [vmem:[#allocation15_spill] sm:$0xff] %v5755_v17  ;;  %v5759_v19 = vsel %vm442_vm0, %v473_v12, %v474_v13  ;;  %v5772_v29 = vld [vmem:[%s5579_s9 + $0xc8] sm:$0xff]  ;;  %v5781_v30 = vsel %vm442_vm0, %v474_v13, %v476_v18  ;;  %v481_v33 = vrot.slane %v5764_v25, 1  ;;  %v483_v35 = vrot.slane %v5769_v27, 1  ;;  %v5790_v39 = vld [vmem:[%s5579_s9 + $0xd0] sm:$0x3] }
  0x20   : > { %5087 = vmatpush3.bf16.msra.mxu1 %v5084_v53  ;;  %5121 = vmatprep.subr.bf16.mxu0 %v5685_v62  ;;  %7494 = vst [vmem:[#allocation16_spill] sm:$0xff] %v5759_v19  ;;  %7495 = vst [vmem:[#allocation17_spill] sm:$0xff] %v5781_v30  ;;  %v5785_v34 = vsel %vm442_vm0, %v478_v23, %v479_v24  ;;  %v484_v37 = vrot.slane %v5772_v29, 1  ;;  %v5795_v40 = vld [vmem:[%s5579_s9 + $0xd8] sm:$0xff]  ;;  %v5798_v42 = vld [vmem:[%s5579_s9 + $0xe0] sm:$0xff]  ;;  %v486_v44 = vrot.slane %v5790_v39, 1 }
  0x21   : > { %4527 = vmatmul.mubr.msk.f32.gmra.mrb[4].mxu1 %vm523_vm1, %v5674_v56  ;;  %7496 = vst [vmem:[#allocation18_spill] sm:$0xff] %v5785_v34  ;;  %v5807_v43 = vsel %vm442_vm0, %v479_v24, %v481_v33  ;;  %v488_v50 = vrot.slane %v5795_v40, 1  ;;  %v489_v53 = vrot.slane %v5798_v42, 1  ;;  %v5816_v54 = vld [vmem:[%s5579_s9 + $0xe8] sm:$0x3]  ;;  %v5821_v57 = vld [vmem:[%s5579_s9 + $0xf0] sm:$0xff] }
  0x22   : > { %4751 = vmatmul.mubr.msk.f32.gmra.mrb[4].mxu0 %vm523_vm1, %v5702_v1  ;;  %4529 = vmatprep.mubr.msk.f32.mxu1 %vm523_vm1, %v5678_v58  ;;  %7497 = vst [vmem:[#allocation19_spill] sm:$0xff] %v5807_v43  ;;  %v5811_v49 = vsel %vm442_vm0, %v483_v35, %v484_v37  ;;  %v5824_v59 = vld [vmem:[%s5579_s9 + $0xf8] sm:$0xff]  ;;  %v5833_v60 = vsel %vm442_vm0, %v484_v37, %v486_v44  ;;  %v491_v2 = vrot.slane %v5816_v54, 1  ;;  %v493_v5 = vrot.slane %v5821_v57, 1  ;;  %v5842_v12 = vld [vmem:[%s5579_s9 + $0x100] sm:$0x3] }
  0x23   : > { %4753 = vmatprep.mubr.msk.f32.mxu0 %vm523_vm1, %v5706_v3  ;;  %7498 = vst [vmem:[#allocation20_spill] sm:$0xff] %v5811_v49  ;;  %7499 = vst [vmem:[#allocation21_spill] sm:$0xff] %v5833_v60  ;;  %v5837_v4 = vsel %vm442_vm0, %v488_v50, %v489_v53  ;;  %v494_v10 = vrot.slane %v5824_v59, 1  ;;  %v5847_v13 = vld [vmem:[%s5579_s9 + $0x108] sm:$0xff]  ;;  %v5850_v18 = vld [vmem:[%s5579_s9 + $0x110] sm:$0xff]  ;;  %v496_v24 = vrot.slane %v5842_v12, 1 }
  0x24   : > { %7500 = vst [vmem:[#allocation22_spill] sm:$0xff] %v5837_v4  ;;  %v5859_v23 = vsel %vm442_vm0, %v489_v53, %v491_v2  ;;  %v498_v35 = vrot.slane %v5847_v13, 1  ;;  %v499_v37 = vrot.slane %v5850_v18, 1  ;;  %v5868_v44 = vld [vmem:[%s5579_s9 + $0x118] sm:$0x3]  ;;  %v366_v50 = vld [vmem:[%s7380_s1 + $0x40] sm:$0xff] }
  0x25   : > { %4530 = vmatmul.mubr.msk.f32.gmra.mrb[6].mxu1 %vm523_vm1, %v5702_v1  ;;  %7501 = vst [vmem:[#allocation23_spill] sm:$0xff] %v5859_v23  ;;  %v5863_v33 = vsel %vm442_vm0, %v493_v5, %v494_v10  ;;  %v5876_v53 = vld [vmem:[%s5579_s9 + $0x120] sm:$0xff]  ;;  %v5879_v2 = vld [vmem:[%s5579_s9 + $0x128] sm:$0xff]  ;;  %v5891_v48 = vsel %vm442_vm0, %v494_v10, %v496_v24  ;;  %v501_v41 = vrot.slane %v5868_v44, 1  ;;  %v5907_v10 = vld [vmem:[%s5579_s9 + $0x138] sm:$0xff] }
  0x26   : > { %4754 = vmatmul.mubr.msk.f32.gmra.mrb[6].mxu0 %vm523_vm1, %v5729_v9  ;;  %4532 = vmatprep.mubr.msk.f32.mxu1 %vm523_vm1, %v5706_v3  ;;  %7502 = vst [vmem:[#allocation24_spill] sm:$0xff] %v5863_v33  ;;  %v367_v5 = vld [vmem:[%s7380_s1 + $0x48] sm:$0xff]  ;;  %7503 = vst [vmem:[#allocation25_spill] sm:$0xff] %v5891_v48  ;;  %v5910_v24 = vld [vmem:[%s5579_s9 + $0x140] sm:$0xff] }
  0x27   : > { %4756 = vmatprep.mubr.msk.f32.mxu0 %vm523_vm1, %v5733_v11  ;;  %v5981_v58 = vld [vmem:[%s5579_s9 + $0x178] sm:$0x3]  ;;  %v5989_v56 = vld [vmem:[%s5579_s9 + $0x188] sm:$0xff]  ;;  %v6007_v28 = vld [vmem:[%s5579_s9 + $0x190] sm:$0x3] }
  0x28   : > { %7512 = vst [vmem:[#allocation34_spill] sm:$0xff] %v5989_v56  ;;  %v1769_v55 = vrot.slane %v5989_v56, 1  ;;  %7515 = vst [vmem:[#allocation37_spill] sm:$0xff] %v6007_v28 }
  0x29   : > { %4533 = vmatmul.mubr.msk.f32.gmra.mrb[8].mxu1 %vm523_vm1, %v5729_v9  ;;  %v5955_v9 = vld [vmem:[%s5579_s9 + $0x160] sm:$0x3] }
  0x2a   : > { %4757 = vmatmul.mubr.msk.f32.gmra.mrb[8].mxu0 %vm523_vm1, %v5755_v17  ;;  %4535 = vmatprep.mubr.msk.f32.mxu1 %vm523_vm1, %v5733_v11 }
  0x2b   : > { %4759 = vmatprep.mubr.msk.f32.mxu0 %vm523_vm1, %v5759_v19 }
  0x2d   : > { %4536 = vmatmul.mubr.msk.f32.gmra.mrb[10].mxu1 %vm523_vm1, %v5755_v17 }
  0x2e   : > { %4760 = vmatmul.mubr.msk.f32.gmra.mrb[10].mxu0 %vm523_vm1, %v5781_v30  ;;  %4538 = vmatprep.mubr.msk.f32.mxu1 %vm523_vm1, %v5759_v19 }
  0x2f   : > { %4762 = vmatprep.mubr.msk.f32.mxu0 %vm523_vm1, %v5785_v34 }
  0x31   : > { %4539 = vmatmul.mubr.msk.f32.gmra.mrb[12].mxu1 %vm523_vm1, %v5781_v30  ;;  %v509_v30 = vrot.slane %v5910_v24, 1 }
  0x32   : > { %4763 = vmatmul.mubr.msk.f32.gmra.mrb[12].mxu0 %vm523_vm1, %v5807_v43  ;;  %4541 = vmatprep.mubr.msk.f32.mxu1 %vm523_vm1, %v5785_v34  ;;  %v5900_v34 = vld [vmem:[%s5579_s9 + $0x130] sm:$0x3] }
  0x33   : > { %4765 = vmatprep.mubr.msk.f32.mxu0 %vm523_vm1, %v5811_v49 }
  0x35   : > { %4542 = vmatmul.mubr.msk.f32.gmra.mrb[14].mxu1 %vm523_vm1, %v5807_v43  ;;  %v504_v43 = vrot.slane %v5879_v2, 1 }
  0x36   : > { %4766 = vmatmul.mubr.msk.f32.gmra.mrb[14].mxu0 %vm523_vm1, %v5833_v60  ;;  %4544 = vmatprep.mubr.msk.f32.mxu1 %vm523_vm1, %v5811_v49  ;;  %v503_v49 = vrot.slane %v5876_v53, 1 }
  0x37   : > { %4768 = vmatprep.mubr.msk.f32.mxu0 %vm523_vm1, %v5837_v4 }
  0x39   : > { %4545 = vmatmul.mubr.msk.f32.gmra.mrb[16].mxu1 %vm523_vm1, %v5833_v60  ;;  %v5895_v60 = vsel %vm442_vm0, %v498_v35, %v499_v37  ;;  %v5919_v35 = vsel %vm442_vm0, %v499_v37, %v501_v41  ;;  %v5934_v41 = vld [vmem:[%s5579_s9 + $0x150] sm:$0xff]  ;;  %v5937_v37 = vld [vmem:[%s5579_s9 + $0x158] sm:$0xff] }
  0x3a   : > { %4769 = vmatmul.mubr.msk.f32.gmra.mrb[16].mxu0 %vm523_vm1, %v5859_v23  ;;  %4547 = vmatprep.mubr.msk.f32.mxu1 %vm523_vm1, %v5837_v4  ;;  %7504 = vst [vmem:[#allocation26_spill] sm:$0xff] %v5895_v60  ;;  %v5902_v4 = vpack.c.bf16 %v367_v5, %v366_v50  ;;  %7505 = vst [vmem:[#allocation27_spill] sm:$0xff] %v5919_v35  ;;  %v506_v50 = vrot.slane %v5900_v34, 1  ;;  %v5924_v5 = vsel %vm442_vm0, %v503_v49, %v504_v43 }
  0x3b   : > { %4771 = vmatprep.mubr.msk.f32.mxu0 %vm523_vm1, %v5863_v33  ;;  %7506 = vst [vmem:[#allocation28_spill] sm:$0xff] %v5924_v5  ;;  %v513_v17 = vrot.slane %v5934_v41, 1  ;;  %v514_v11 = vrot.slane %v5937_v37, 1 }
  0x3c   : > { %5089 = vmatprep.subr.bf16.mxu1 %v5902_v4  ;;  %v5946_v49 = vsel %vm442_vm0, %v504_v43, %v506_v50  ;;  %v5963_v43 = vld [vmem:[%s5579_s9 + $0x170] sm:$0xff]  ;;  %v516_v50 = vrot.slane %v5955_v9, 1 }
  0x3d   : > { %4548 = vmatmul.mubr.msk.f32.gmra.mrb[18].mxu1 %vm523_vm1, %v5859_v23  ;;  %v508_v23 = vrot.slane %v5907_v10, 1  ;;  %7507 = vst [vmem:[#allocation29_spill] sm:$0xff] %v5946_v49  ;;  %v519_v1 = vrot.slane %v5963_v43, 1 }
  0x3e   : > { %4772 = vmatmul.mubr.msk.f32.gmra.mrb[18].mxu0 %vm523_vm1, %v5891_v48  ;;  %4550 = vmatprep.mubr.msk.f32.mxu1 %vm523_vm1, %v5863_v33  ;;  %v5929_v33 = vld [vmem:[%s5579_s9 + $0x148] sm:$0x3] }
  0x3f   : > { %4774 = vmatprep.mubr.msk.f32.mxu0 %vm523_vm1, %v5895_v60  ;;  %v511_v19 = vrot.slane %v5929_v33, 1 }
  0x41   : > { %4551 = vmatmul.mubr.msk.f32.gmra.mrb[20].mxu1 %vm523_vm1, %v5891_v48  ;;  %v5950_v48 = vsel %vm442_vm0, %v508_v23, %v509_v30  ;;  %v5972_v23 = vsel %vm442_vm0, %v509_v30, %v511_v19  ;;  %v521_v19 = vrot.slane %v5981_v58, 1 }
  0x42   : > { %4775 = vmatmul.mubr.msk.f32.gmra.mrb[20].mxu0 %vm523_vm1, %v5919_v35  ;;  %4553 = vmatprep.mubr.msk.f32.mxu1 %vm523_vm1, %v5895_v60  ;;  %7508 = vst [vmem:[#allocation30_spill] sm:$0xff] %v5950_v48  ;;  %v5960_v60 = vld [vmem:[%s5579_s9 + $0x168] sm:$0xff]  ;;  %7509 = vst [vmem:[#allocation31_spill] sm:$0xff] %v5972_v23 }
  0x43   : > { %4777 = vmatprep.mubr.msk.f32.mxu0 %vm523_vm1, %v5924_v5  ;;  %v518_v3 = vrot.slane %v5960_v60, 1 }
  0x45   : > { %4554 = vmatmul.mubr.msk.f32.gmra.mrb[22].mxu1 %vm523_vm1, %v5919_v35  ;;  %v5976_v35 = vsel %vm442_vm0, %v513_v17, %v514_v11  ;;  %v5998_v17 = vsel %vm442_vm0, %v514_v11, %v516_v50  ;;  %v6002_v30 = vsel %vm442_vm0, %v518_v3, %v519_v1  ;;  %v6018_v3 = vsel %vm442_vm0, %v519_v1, %v521_v19 }
  0x46   : > { %4778 = vmatmul.mubr.msk.f32.gmra.mrb[22].mxu0 %vm523_vm1, %v5946_v49  ;;  %4556 = vmatprep.mubr.msk.f32.mxu1 %vm523_vm1, %v5924_v5  ;;  %7510 = vst [vmem:[#allocation32_spill] sm:$0xff] %v5976_v35  ;;  %v5986_v5 = vld [vmem:[%s5579_s9 + $0x180] sm:$0xff]  ;;  %7513 = vst [vmem:[#allocation35_spill] sm:$0xff] %v5998_v17  ;;  %v1771_v11 = vrot.slane %v6007_v28, 1  ;;  %v1111_v1 = vrot.slane %v5611_v31, 2  ;;  %v384_v31 = vld [vmem:[%s7380_s1 + $0xd0] sm:$0xff] }
  0x47   : > { %4780 = vmatprep.mubr.msk.f32.mxu0 %vm523_vm1, %v5950_v48  ;;  %7511 = vst [vmem:[#allocation33_spill] sm:$0xff] %v5986_v5  ;;  %7514 = vst [vmem:[#allocation36_spill] sm:$0xff] %v6002_v30 }
  0x48   : > { %7516 = vst [vmem:[#allocation38_spill] sm:$0xff] %v6018_v3 }
  0x49   : > { %4557 = vmatmul.mubr.msk.f32.gmra.mrb[24].mxu1 %vm523_vm1, %v5946_v49  ;;  %v1768_v49 = vrot.slane %v5986_v5, 1 }
  0x4a   : > { %4781 = vmatmul.mubr.msk.f32.gmra.mrb[24].mxu0 %vm523_vm1, %v5972_v23  ;;  %4559 = vmatprep.mubr.msk.f32.mxu1 %vm523_vm1, %v5950_v48  ;;  %v1108_v48 = vrot.slane %v5594_v22, 2 }
  0x4b   : > { %4783 = vmatprep.mubr.msk.f32.mxu0 %vm523_vm1, %v5976_v35  ;;  %v6022_v50 = vsel %vm442_vm0, %v1768_v49, %v1769_v55  ;;  %v6036_v49 = vsel %vm442_vm0, %v1769_v55, %v1771_v11  ;;  %v369_v55 = vld [vmem:[%s7380_s1 + $0x58] sm:$0xff] }
  0x4c   : > { %7517 = vst [vmem:[#allocation39_spill] sm:$0xff] %v6022_v50  ;;  %7518 = vst [vmem:[#allocation40_spill] sm:$0xff] %v6036_v49 }
  0x4d   : > { %4560 = vmatmul.mubr.msk.f32.gmra.mrb[26].mxu1 %vm523_vm1, %v5972_v23  ;;  %v1109_v23 = vrot.slane %v5602_v26, 2 }
  0x4e   : > { %4784 = vmatmul.mubr.msk.f32.gmra.mrb[26].mxu0 %vm523_vm1, %v5998_v17  ;;  %4562 = vmatprep.mubr.msk.f32.mxu1 %vm523_vm1, %v5976_v35  ;;  %v1114_v35 = vrot.slane %v5622_v36, 2 }
  0x4f   : > { %4786 = vmatprep.mubr.msk.f32.mxu0 %vm523_vm1, %v6002_v30  ;;  %v6039_v19 = vsel %vm1102_vm2, %v1108_v48, %v1109_v23  ;;  %v368_v48 = vld [vmem:[%s7380_s1 + $0x50] sm:$0xff]  ;;  %v6064_v11 = vsel %vm1102_vm2, %v1109_v23, %v1111_v1  ;;  %v370_v23 = vld [vmem:[%s7380_s1 + $0x60] sm:$0xff]  ;;  %v1121_v1 = vrot.slane %v5645_v47, 2 }
  0x50   : > { %7519 = vst [vmem:[#allocation41_spill] sm:$0xff] %v6039_v19  ;;  %v5092_v56 = vpack.c.bf16 %v369_v55, %v368_v48  ;;  %v1123_v48 = vrot.slane %v5656_v51, 2  ;;  %v1124_v55 = vrot.slane %v5659_v52, 2 }
  0x51   : > { %4563 = vmatmul.mubr.msk.f32.gmra.mrb[28].mxu1 %vm523_vm1, %v5998_v17  ;;  %v1113_v17 = vrot.slane %v5614_v32, 2 }
  0x52   : > { %4787 = vmatmul.mubr.msk.f32.gmra.mrb[28].mxu0 %vm523_vm1, %v6018_v3  ;;  %4565 = vmatprep.mubr.msk.f32.mxu1 %vm523_vm1, %v6002_v30  ;;  %v1118_v30 = vrot.slane %v5639_v45, 2 }
  0x53   : > { %4789 = vmatprep.mubr.msk.f32.mxu0 %vm523_vm1, %v6022_v50  ;;  %v385_v50 = vld [vmem:[%s7380_s1 + $0xd8] sm:$0xff] }
  0x54   : > { %v5124_v28 = vpack.c.bf16 %v385_v50, %v384_v31 }
  0x55   : > { %4566 = vmatmul.mubr.msk.f32.gmra.mrb[30].mxu1 %vm523_vm1, %v6018_v3  ;;  %v1116_v3 = vrot.slane %v5626_v38, 2  ;;  %v387_v38 = vld [vmem:[%s7380_s1 + $0xe8] sm:$0xff] }
  0x56   : > { %4790 = vmatmul.mubr.msk.f32.gmra.mrb[30].mxu0 %vm523_vm1, %v6036_v49  ;;  %4576 = vmatprep.mubr.msk.f32.mxu1 %vm523_vm1, %v5588_v20  ;;  %v6068_v49 = vsel %vm1102_vm2, %v1113_v17, %v1114_v35  ;;  %v1119_v20 = vrot.slane %v5642_v46, 2  ;;  %v371_v17 = vld [vmem:[%s7380_s1 + $0x68] sm:$0xff] }
  0x57   : > { %4800 = vmatprep.mubr.msk.f32.mxu0 %vm523_vm1, %v6039_v19  ;;  %v386_v19 = vld [vmem:[%s7380_s1 + $0xe0] sm:$0xff]  ;;  %v6094_v50 = vsel %vm1102_vm2, %v1114_v35, %v1116_v3  ;;  %v6120_v35 = vsel %vm1102_vm2, %v1123_v48, %v1124_v55  ;;  %v1129_v3 = vrot.slane %v5693_v0, 2  ;;  %v1141_v48 = vrot.slane %v5764_v25, 2 }
  0x58   : > { %v6098_v31 = vsel %vm1102_vm2, %v1118_v30, %v1119_v20  ;;  %v6116_v47 = vsel %vm1102_vm2, %v1119_v20, %v1121_v1  ;;  %v1128_v30 = vrot.slane %v5690_v63, 2  ;;  %v1139_v1 = vrot.slane %v5746_v16, 2 }
  0x59   : > { %4577 = vmatmul.mubr.msk.f32.vlgmr.msra.gmra.mrb[0].mxu1 %vm523_vm1, %v5591_v21 }
  0x5a   : > { %4801 = vmatmul.mubr.msk.f32.vlgmr.msra.gmra.mrb[0].mxu0 %vm523_vm1, %v6064_v11  ;;  %4579 = vmatprep.mubr.msk.f32.mxu1 %vm523_vm1, %v5594_v22  ;;  %v6103_v22 = vpack.c.bf16 %v387_v38, %v386_v19  ;;  %v1134_v19 = vrot.slane %v5720_v8, 2  ;;  %v1136_v38 = vrot.slane %v5738_v14, 2  ;;  %v6186_v25 = vsel %vm1102_vm2, %v1139_v1, %v1141_v48 }
  0x5b   : > { %5123 = vmatpush3.bf16.msra.mxu0 %v5685_v62  ;;  %4803 = vmatprep.mubr.msk.f32.mxu0 %vm523_vm1, %v6068_v49  ;;  %v6107_v62 = vpack.c.bf16 %v371_v17, %v370_v23  ;;  %v1138_v17 = vrot.slane %v5743_v15, 2  ;;  %v1154_v48 = vrot.slane %v5824_v59, 2 }
  0x5c   : > { %5125 = vmatprep.subr.bf16.mxu0 %v5124_v28  ;;  %5091 = vmatpush3.bf16.msra.mxu1 %v5902_v4  ;;  %v1126_v4 = vrot.slane %v5683_v61, 2  ;;  %v1133_v61 = vrot.slane %v5717_v7, 2  ;;  %v6169_v14 = vsel %vm1102_vm2, %v1134_v19, %v1136_v38  ;;  %v1151_v38 = vrot.slane %v5816_v54, 2 }
  0x5d   : > { %4580 = vmatmul.mubr.msk.f32.gmra.mrb[2].mxu1 %vm523_vm1, %v5602_v26  ;;  %5093 = vmatprep.subr.bf16.mxu1 %v5092_v56  ;;  %v1164_v26 = vrot.slane %v5879_v2, 2 }
  0x5e   : > { %4804 = vmatmul.mubr.msk.f32.gmra.mrb[2].mxu0 %vm523_vm1, %v6094_v50  ;;  %4582 = vmatprep.mubr.msk.f32.mxu1 %vm523_vm1, %v5614_v32  ;;  %v6135_v20 = vsel %vm1102_vm2, %v1124_v55, %v1126_v4  ;;  %v6156_v23 = vsel %vm1102_vm2, %v1133_v61, %v1134_v19  ;;  %v6173_v55 = vsel %vm1102_vm2, %v1138_v17, %v1139_v1  ;;  %v1143_v4 = vrot.slane %v5769_v27, 2 }
  0x5f   : > { %4806 = vmatprep.mubr.msk.f32.mxu0 %vm523_vm1, %v6098_v31  ;;  %5127 = vmatpush3.bf16.msra.mxu0 %v5124_v28  ;;  %v1131_v28 = vrot.slane %v5711_v6, 2  ;;  %v1148_v61 = vrot.slane %v5795_v40, 2  ;;  %v1149_v19 = vrot.slane %v5798_v42, 2  ;;  %v1153_v1 = vrot.slane %v5821_v57, 2 }
  0x60   : > { %5095 = vmatpush3.bf16.msra.mxu1 %v5092_v56  ;;  %5129 = vmatprep.subr.bf16.mxu0 %v6103_v22  ;;  %v6139_v56 = vsel %vm1102_vm2, %v1128_v30, %v1129_v3  ;;  %v1144_v30 = vrot.slane %v5772_v29, 2 }
  0x61   : > { %4583 = vmatmul.mubr.msk.f32.gmra.mrb[4].mxu1 %vm523_vm1, %v5622_v36  ;;  %5097 = vmatprep.subr.bf16.mxu1 %v6107_v62  ;;  %v6152_v6 = vsel %vm1102_vm2, %v1129_v3, %v1131_v28  ;;  %v1146_v3 = vrot.slane %v5790_v39, 2  ;;  %v6207_v17 = vsel %vm1102_vm2, %v1148_v61, %v1149_v19  ;;  %v6220_v54 = vsel %vm1102_vm2, %v1149_v19, %v1151_v38 }
  0x62   : > { %4807 = vmatmul.mubr.msk.f32.gmra.mrb[4].mxu0 %vm523_vm1, %v6116_v47  ;;  %4585 = vmatprep.mubr.msk.f32.mxu1 %vm523_vm1, %v5639_v45  ;;  %v6190_v28 = vsel %vm1102_vm2, %v1143_v4, %v1144_v30  ;;  %v1156_v4 = vrot.slane %v5842_v12, 2  ;;  %v1159_v61 = vrot.slane %v5850_v18, 2  ;;  %v1161_v19 = vrot.slane %v5868_v44, 2 }
  0x63   : > { %4809 = vmatprep.mubr.msk.f32.mxu0 %vm523_vm1, %v6120_v35  ;;  %v6203_v39 = vsel %vm1102_vm2, %v1144_v30, %v1146_v3  ;;  %v6224_v30 = vsel %vm1102_vm2, %v1153_v1, %v1154_v48  ;;  %v1158_v3 = vrot.slane %v5847_v13, 2  ;;  %v1163_v1 = vrot.slane %v5876_v53, 2 }
  0x64   : > { %7520 = vst [vmem:[#allocation42_spill] sm:$0xff] %v6224_v30  ;;  %v6237_v12 = vsel %vm1102_vm2, %v1154_v48, %v1156_v4  ;;  %v6254_v44 = vsel %vm1102_vm2, %v1159_v61, %v1161_v19  ;;  %v1166_v48 = vrot.slane %v5900_v34, 2 }
  0x65   : > { %4586 = vmatmul.mubr.msk.f32.gmra.mrb[6].mxu1 %vm523_vm1, %v5642_v46  ;;  %v6241_v38 = vsel %vm1102_vm2, %v1158_v3, %v1159_v61  ;;  %7522 = vst [vmem:[#allocation44_spill] sm:$0xff] %v6254_v44  ;;  %v6258_v4 = vsel %vm1102_vm2, %v1163_v1, %v1164_v26  ;;  %v1168_v3 = vrot.slane %v5907_v10, 2  ;;  %v1171_v61 = vrot.slane %v5929_v33, 2 }
  0x66   : > { %4810 = vmatmul.mubr.msk.f32.gmra.mrb[6].mxu0 %vm523_vm1, %v6135_v20  ;;  %4588 = vmatprep.mubr.msk.f32.mxu1 %vm523_vm1, %v5656_v51  ;;  %7521 = vst [vmem:[#allocation43_spill] sm:$0xff] %v6241_v38  ;;  %7523 = vst [vmem:[#allocation45_spill] sm:$0xff] %v6258_v4  ;;  %v6271_v34 = vsel %vm1102_vm2, %v1164_v26, %v1166_v48  ;;  %v1173_v1 = vrot.slane %v5934_v41, 2  ;;  %v1176_v33 = vrot.slane %v5955_v9, 2 }
  0x67   : > { %4812 = vmatprep.mubr.msk.f32.mxu0 %vm523_vm1, %v6139_v56  ;;  %7524 = vst [vmem:[#allocation46_spill] sm:$0xff] %v6271_v34 }
  0x69   : > { %4589 = vmatmul.mubr.msk.f32.gmra.mrb[8].mxu1 %vm523_vm1, %v5659_v52 }
  0x6a   : > { %4813 = vmatmul.mubr.msk.f32.gmra.mrb[8].mxu0 %vm523_vm1, %v6152_v6  ;;  %4591 = vmatprep.mubr.msk.f32.mxu1 %vm523_vm1, %v5690_v63 }
  0x6b   : > { %4815 = vmatprep.mubr.msk.f32.mxu0 %vm523_vm1, %v6156_v23 }
  0x6d   : > { %4592 = vmatmul.mubr.msk.f32.gmra.mrb[10].mxu1 %vm523_vm1, %v5693_v0 }
  0x6e   : > { %4816 = vmatmul.mubr.msk.f32.gmra.mrb[10].mxu0 %vm523_vm1, %v6169_v14  ;;  %4594 = vmatprep.mubr.msk.f32.mxu1 %vm523_vm1, %v5717_v7 }
  0x6f   : > { %4818 = vmatprep.mubr.msk.f32.mxu0 %vm523_vm1, %v6173_v55 }
  0x71   : > { %4595 = vmatmul.mubr.msk.f32.gmra.mrb[12].mxu1 %vm523_vm1, %v5720_v8 }
  0x72   : > { %4819 = vmatmul.mubr.msk.f32.gmra.mrb[12].mxu0 %vm523_vm1, %v6186_v25  ;;  %4597 = vmatprep.mubr.msk.f32.mxu1 %vm523_vm1, %v5743_v15 }
  0x73   : > { %4821 = vmatprep.mubr.msk.f32.mxu0 %vm523_vm1, %v6190_v28 }
  0x75   : > { %4598 = vmatmul.mubr.msk.f32.gmra.mrb[14].mxu1 %vm523_vm1, %v5746_v16 }
  0x76   : > { %4822 = vmatmul.mubr.msk.f32.gmra.mrb[14].mxu0 %vm523_vm1, %v6203_v39  ;;  %4600 = vmatprep.mubr.msk.f32.mxu1 %vm523_vm1, %v5769_v27 }
  0x77   : > { %4824 = vmatprep.mubr.msk.f32.mxu0 %vm523_vm1, %v6207_v17 }
  0x79   : > { %4601 = vmatmul.mubr.msk.f32.gmra.mrb[16].mxu1 %vm523_vm1, %v5772_v29 }
  0x7a   : > { %4825 = vmatmul.mubr.msk.f32.gmra.mrb[16].mxu0 %vm523_vm1, %v6220_v54  ;;  %4603 = vmatprep.mubr.msk.f32.mxu1 %vm523_vm1, %v5795_v40 }
  0x7b   : > { %4827 = vmatprep.mubr.msk.f32.mxu0 %vm523_vm1, %v6224_v30  ;;  %v1169_v30 = vrot.slane %v5910_v24, 2 }
  0x7d   : > { %4604 = vmatmul.mubr.msk.f32.gmra.mrb[18].mxu1 %vm523_vm1, %v5798_v42  ;;  %v6275_v19 = vsel %vm1102_vm2, %v1168_v3, %v1169_v30  ;;  %v6288_v26 = vsel %vm1102_vm2, %v1169_v30, %v1171_v61  ;;  %v1178_v3 = vrot.slane %v5960_v60, 2  ;;  %v1181_v30 = vrot.slane %v5981_v58, 2 }
  0x7e   : > { %4828 = vmatmul.mubr.msk.f32.gmra.mrb[18].mxu0 %vm523_vm1, %v6237_v12  ;;  %4606 = vmatprep.mubr.msk.f32.mxu1 %vm523_vm1, %v5821_v57  ;;  %7525 = vst [vmem:[#allocation47_spill] sm:$0xff] %v6275_v19  ;;  %7526 = vst [vmem:[#allocation48_spill] sm:$0xff] %v6288_v26 }
  0x7f   : > { %4830 = vmatprep.mubr.msk.f32.mxu0 %vm523_vm1, %v6241_v38  ;;  %v1174_v38 = vrot.slane %v5937_v37, 2 }
  0x81   : > { %4607 = vmatmul.mubr.msk.f32.gmra.mrb[20].mxu1 %vm523_vm1, %v5824_v59  ;;  %v6292_v48 = vsel %vm1102_vm2, %v1173_v1, %v1174_v38  ;;  %v6305_v9 = vsel %vm1102_vm2, %v1174_v38, %v1176_v33  ;;  %v2034_v1 = vrot.slane %v5986_v5, 2  ;;  %v7532_v38 = vld [vmem:[#allocation37_spill] sm:$0xff] }
  0x82   : > { %4831 = vmatmul.mubr.msk.f32.gmra.mrb[20].mxu0 %vm523_vm1, %v6254_v44  ;;  %4609 = vmatprep.mubr.msk.f32.mxu1 %vm523_vm1, %v5847_v13  ;;  %7527 = vst [vmem:[#allocation49_spill] sm:$0xff] %v6292_v48  ;;  %7528 = vst [vmem:[#allocation50_spill] sm:$0xff] %v6305_v9  ;;  %v2037_v33 = vrot.slane %v7532_v38, 2 }
  0x83   : > { %4833 = vmatprep.mubr.msk.f32.mxu0 %vm523_vm1, %v6258_v4  ;;  %v1179_v4 = vrot.slane %v5963_v43, 2 }
  0x85   : > { %4610 = vmatmul.mubr.msk.f32.gmra.mrb[22].mxu1 %vm523_vm1, %v5850_v18  ;;  %v6309_v61 = vsel %vm1102_vm2, %v1178_v3, %v1179_v4  ;;  %v6322_v58 = vsel %vm1102_vm2, %v1179_v4, %v1181_v30  ;;  %v7533_v3 = vld [vmem:[#allocation2_spill] sm:$0xff]  ;;  %v389_v30 = vld [vmem:[%s7380_s1 + $0xf8] sm:$0xff] }
  0x86   : > { %4834 = vmatmul.mubr.msk.f32.gmra.mrb[22].mxu0 %vm523_vm1, %v6271_v34  ;;  %4612 = vmatprep.mubr.msk.f32.mxu1 %vm523_vm1, %v5876_v53  ;;  %7529 = vst [vmem:[#allocation51_spill] sm:$0xff] %v6309_v61  ;;  %7531 = vst [vmem:[#allocation52_spill] sm:$0xff] %v6322_v58  ;;  %v1103_v5 = vrot.slane %v7533_v3, 2  ;;  %v390_v3 = vld [vmem:[%s7380_s1 + $0x100] sm:$0xff] }
  0x87   : > { %4836 = vmatprep.mubr.msk.f32.mxu0 %vm523_vm1, %v6275_v19  ;;  %v7530_v19 = vld [vmem:[#allocation34_spill] sm:$0xff] }
  0x88   : > { %v2035_v34 = vrot.slane %v7530_v19, 2  ;;  %v1104_v19 = vrot.slane %v5591_v21, 2 }
  0x89   : > { %4613 = vmatmul.mubr.msk.f32.gmra.mrb[24].mxu1 %vm523_vm1, %v5879_v2 }
  0x8a   : > { %4837 = vmatmul.mubr.msk.f32.gmra.mrb[24].mxu0 %vm523_vm1, %v6288_v26  ;;  %4615 = vmatprep.mubr.msk.f32.mxu1 %vm523_vm1, %v5907_v10  ;;  %v6340_v4 = vsel %vm1102_vm2, %v2035_v34, %v2037_v33  ;;  %v1105_v21 = vsel %vm1102_vm2, %v1103_v5, %v1104_v19  ;;  %v372_v5 = vld [vmem:[%s7380_s1 + $0x70] sm:$0xff] }
  0x8b   : > { %4839 = vmatprep.mubr.msk.f32.mxu0 %vm523_vm1, %v6292_v48  ;;  %v6328_v48 = vsel %vm1102_vm2, %v2034_v1, %v2035_v34  ;;  %7536 = vst [vmem:[#allocation2_spill] sm:$0xff] %v6340_v4  ;;  %v373_v1 = vld [vmem:[%s7380_s1 + $0x78] sm:$0xff] }
  0x8c   : > { %7534 = vst [vmem:[#allocation37_spill] sm:$0xff] %v6328_v48  ;;  %v5100_v33 = vpack.c.bf16 %v373_v1, %v372_v5  ;;  %v7544_v5 = vld [vmem:[#allocation49_spill] sm:$0xff] }
  0x8d   : > { %4616 = vmatmul.mubr.msk.f32.gmra.mrb[26].mxu1 %vm523_vm1, %v5910_v24  ;;  %v7545_v1 = vld [vmem:[#allocation33_spill] sm:$0xff] }
  0x8e   : > { %4840 = vmatmul.mubr.msk.f32.gmra.mrb[26].mxu0 %vm523_vm1, %v6305_v9  ;;  %4618 = vmatprep.mubr.msk.f32.mxu1 %vm523_vm1, %v5934_v41  ;;  %v7535_v9 = vld [vmem:[#allocation5_spill] sm:$0xff] }
  0x8f   : > { %4842 = vmatprep.mubr.msk.f32.mxu0 %vm523_vm1, %v6309_v61  ;;  %v1106_v26 = vrot.slane %v7535_v9, 2  ;;  %v388_v9 = vld [vmem:[%s7380_s1 + $0xf0] sm:$0xff] }
  0x90   : > { %v5132_v38 = vpack.c.bf16 %v389_v30, %v388_v9  ;;  %v7541_v9 = vld [vmem:[#allocation46_spill] sm:$0xff]  ;;  %v7542_v30 = vld [vmem:[#allocation47_spill] sm:$0xff] }
  0x91   : > { %4619 = vmatmul.mubr.msk.f32.gmra.mrb[28].mxu1 %vm523_vm1, %v5937_v37  ;;  %v1107_v34 = vsel %vm1102_vm2, %v1104_v19, %v1106_v26  ;;  %v391_v19 = vld [vmem:[%s7380_s1 + $0x108] sm:$0xff]  ;;  %v7537_v26 = vld [vmem:[#allocation41_spill] sm:$0xff] }
  0x92   : > { %4843 = vmatmul.mubr.msk.f32.gmra.mrb[28].mxu0 %vm523_vm1, %v6322_v58  ;;  %4621 = vmatprep.mubr.msk.f32.mxu1 %vm523_vm1, %v5960_v60 }
  0x93   : > { %4845 = vmatprep.mubr.msk.f32.mxu0 %vm523_vm1, %v6328_v48  ;;  %v7548_v48 = vld [vmem:[#allocation3_spill] sm:$0xff] }
  0x95   : > { %4622 = vmatmul.mubr.msk.f32.gmra.mrb[30].mxu1 %vm523_vm1, %v5963_v43 }
  0x96   : > { %4846 = vmatmul.mubr.msk.f32.gmra.mrb[30].mxu0 %vm523_vm1, %v6340_v4  ;;  %4632 = vmatprep.mubr.msk.f32.mxu1 %vm523_vm1, %v1105_v21  ;;  %v6378_v21 = vpack.c.bf16 %v391_v19, %v390_v3  ;;  %v7547_v3 = vld [vmem:[#allocation34_spill] sm:$0xff]  ;;  %v393_v4 = vld [vmem:[%s7380_s1 + $0x118] sm:$0xff] }
  0x97   : > { %4856 = vmatprep.mubr.msk.f32.mxu0 %vm523_vm1, %v5614_v32  ;;  %v6497_v19 = vld [vmem:[%s5579_s9 + $0x1a0] sm:$0xff] }
  0x99   : > { %4633 = vmatmul.mubr.msk.f32.vlgmr.msra.gmra.mrb[0].mxu1 %vm523_vm1, %v1107_v34  ;;  %v7543_v34 = vld [vmem:[#allocation48_spill] sm:$0xff] }
  0x9a   : > { %4857 = vmatmul.mubr.msk.f32.vlgmr.msra.gmra.mrb[0].mxu0 %vm523_vm1, %v5622_v36  ;;  %4635 = vmatprep.mubr.msk.f32.mxu1 %vm523_vm1, %v7537_v26  ;;  %v392_v26 = vld [vmem:[%s7380_s1 + $0x110] sm:$0xff] }
  0x9b   : > { %5131 = vmatpush3.bf16.msra.mxu0 %v6103_v22  ;;  %4859 = vmatprep.mubr.msk.f32.mxu0 %vm523_vm1, %v5639_v45  ;;  %v7538_v22 = vld [vmem:[#allocation42_spill] sm:$0xff] }
  0x9c   : > { %5133 = vmatprep.subr.bf16.mxu0 %v5132_v38  ;;  %5099 = vmatpush3.bf16.msra.mxu1 %v6107_v62  ;;  %v7540_v62 = vld [vmem:[#allocation45_spill] sm:$0xff] }
  0x9d   : > { %4636 = vmatmul.mubr.msk.f32.gmra.mrb[2].mxu1 %vm523_vm1, %v6064_v11  ;;  %5101 = vmatprep.subr.bf16.mxu1 %v5100_v33  ;;  %v7539_v11 = vld [vmem:[#allocation43_spill] sm:$0xff] }
  0x9e   : > { %4860 = vmatmul.mubr.msk.f32.gmra.mrb[2].mxu0 %vm523_vm1, %v5642_v46  ;;  %4638 = vmatprep.mubr.msk.f32.mxu1 %vm523_vm1, %v6068_v49 }
  0x9f   : > { %4862 = vmatprep.mubr.msk.f32.mxu0 %vm523_vm1, %v5656_v51  ;;  %5135 = vmatpush3.bf16.msra.mxu0 %v5132_v38  ;;  %v6486_v38 = vld [vmem:[%s5579_s9 + $0x198] sm:$0xff] }
  0xa0   : > { %5103 = vmatpush3.bf16.msra.mxu1 %v5100_v33  ;;  %5137 = vmatprep.subr.bf16.mxu0 %v6378_v21  ;;  %v7546_v33 = vld [vmem:[#allocation50_spill] sm:$0xff] }
  0xa1   : > { %4639 = vmatmul.mubr.msk.f32.gmra.mrb[4].mxu1 %vm523_vm1, %v6094_v50 }
  0xa2   : > { %4863 = vmatmul.mubr.msk.f32.gmra.mrb[4].mxu0 %vm523_vm1, %v5659_v52  ;;  %4641 = vmatprep.mubr.msk.f32.mxu1 %vm523_vm1, %v6098_v31 }
  0xa3   : > { %4865 = vmatprep.mubr.msk.f32.mxu0 %vm523_vm1, %v5690_v63 }
  0xa5   : > { %4642 = vmatmul.mubr.msk.f32.gmra.mrb[6].mxu1 %vm523_vm1, %v6116_v47 }
  0xa6   : > { %4866 = vmatmul.mubr.msk.f32.gmra.mrb[6].mxu0 %vm523_vm1, %v5693_v0  ;;  %4644 = vmatprep.mubr.msk.f32.mxu1 %vm523_vm1, %v6120_v35 }
  0xa7   : > { %4868 = vmatprep.mubr.msk.f32.mxu0 %vm523_vm1, %v5717_v7 }
  0xa9   : > { %4645 = vmatmul.mubr.msk.f32.gmra.mrb[8].mxu1 %vm523_vm1, %v6135_v20 }
  0xaa   : > { %4869 = vmatmul.mubr.msk.f32.gmra.mrb[8].mxu0 %vm523_vm1, %v5720_v8  ;;  %4647 = vmatprep.mubr.msk.f32.mxu1 %vm523_vm1, %v6139_v56 }
  0xab   : > { %4871 = vmatprep.mubr.msk.f32.mxu0 %vm523_vm1, %v5743_v15 }
  0xad   : > { %4648 = vmatmul.mubr.msk.f32.gmra.mrb[10].mxu1 %vm523_vm1, %v6152_v6 }
  0xae   : > { %4872 = vmatmul.mubr.msk.f32.gmra.mrb[10].mxu0 %vm523_vm1, %v5746_v16  ;;  %4650 = vmatprep.mubr.msk.f32.mxu1 %vm523_vm1, %v6156_v23 }
  0xaf   : > { %4874 = vmatprep.mubr.msk.f32.mxu0 %vm523_vm1, %v5769_v27 }
  0xb1   : > { %4651 = vmatmul.mubr.msk.f32.gmra.mrb[12].mxu1 %vm523_vm1, %v6169_v14 }
  0xb2   : > { %4875 = vmatmul.mubr.msk.f32.gmra.mrb[12].mxu0 %vm523_vm1, %v5772_v29  ;;  %4653 = vmatprep.mubr.msk.f32.mxu1 %vm523_vm1, %v6173_v55 }
  0xb3   : > { %4877 = vmatprep.mubr.msk.f32.mxu0 %vm523_vm1, %v5795_v40 }
  0xb5   : > { %4654 = vmatmul.mubr.msk.f32.gmra.mrb[14].mxu1 %vm523_vm1, %v6186_v25 }
  0xb6   : > { %4878 = vmatmul.mubr.msk.f32.gmra.mrb[14].mxu0 %vm523_vm1, %v5798_v42  ;;  %4656 = vmatprep.mubr.msk.f32.mxu1 %vm523_vm1, %v6190_v28 }
  0xb7   : > { %4880 = vmatprep.mubr.msk.f32.mxu0 %vm523_vm1, %v5821_v57 }
  0xb9   : > { %4657 = vmatmul.mubr.msk.f32.gmra.mrb[16].mxu1 %vm523_vm1, %v6203_v39 }
  0xba   : > { %4881 = vmatmul.mubr.msk.f32.gmra.mrb[16].mxu0 %vm523_vm1, %v5824_v59  ;;  %4659 = vmatprep.mubr.msk.f32.mxu1 %vm523_vm1, %v6207_v17 }
  0xbb   : > { %4883 = vmatprep.mubr.msk.f32.mxu0 %vm523_vm1, %v5847_v13 }
  0xbd   : > { %4660 = vmatmul.mubr.msk.f32.gmra.mrb[18].mxu1 %vm523_vm1, %v6220_v54 }
  0xbe   : > { %4884 = vmatmul.mubr.msk.f32.gmra.mrb[18].mxu0 %vm523_vm1, %v5850_v18  ;;  %4662 = vmatprep.mubr.msk.f32.mxu1 %vm523_vm1, %v7538_v22 }
  0xbf   : > { %4886 = vmatprep.mubr.msk.f32.mxu0 %vm523_vm1, %v5876_v53 }
  0xc1   : > { %4663 = vmatmul.mubr.msk.f32.gmra.mrb[20].mxu1 %vm523_vm1, %v6237_v12 }
  0xc2   : > { %4887 = vmatmul.mubr.msk.f32.gmra.mrb[20].mxu0 %vm523_vm1, %v5879_v2  ;;  %4665 = vmatprep.mubr.msk.f32.mxu1 %vm523_vm1, %v7539_v11  ;;  %v7552_v11 = vld [vmem:[#allocation10_spill] sm:$0xff] }
  0xc3   : > { %4889 = vmatprep.mubr.msk.f32.mxu0 %vm523_vm1, %v5907_v10 }
  0xc5   : > { %4666 = vmatmul.mubr.msk.f32.gmra.mrb[22].mxu1 %vm523_vm1, %v6254_v44  ;;  %v7551_v44 = vld [vmem:[#allocation9_spill] sm:$0xff] }
  0xc6   : > { %4890 = vmatmul.mubr.msk.f32.gmra.mrb[22].mxu0 %vm523_vm1, %v5910_v24  ;;  %4668 = vmatprep.mubr.msk.f32.mxu1 %vm523_vm1, %v7540_v62 }
  0xc7   : > { %4892 = vmatprep.mubr.msk.f32.mxu0 %vm523_vm1, %v5934_v41 }
  0xc9   : > { %4669 = vmatmul.mubr.msk.f32.gmra.mrb[24].mxu1 %vm523_vm1, %v7541_v9  ;;  %v7550_v9 = vld [vmem:[#allocation4_spill] sm:$0xff] }
  0xca   : > { %4893 = vmatmul.mubr.msk.f32.gmra.mrb[24].mxu0 %vm523_vm1, %v5937_v37  ;;  %4671 = vmatprep.mubr.msk.f32.mxu1 %vm523_vm1, %v7542_v30  ;;  %v5140_v30 = vpack.c.bf16 %v393_v4, %v392_v26  ;;  %v7558_v4 = vld [vmem:[#allocation16_spill] sm:$0xff] }
  0xcb   : > { %4895 = vmatprep.mubr.msk.f32.mxu0 %vm523_vm1, %v5960_v60 }
  0xcd   : > { %4672 = vmatmul.mubr.msk.f32.gmra.mrb[26].mxu1 %vm523_vm1, %v7543_v34 }
  0xce   : > { %4896 = vmatmul.mubr.msk.f32.gmra.mrb[26].mxu0 %vm523_vm1, %v5963_v43  ;;  %4674 = vmatprep.mubr.msk.f32.mxu1 %vm523_vm1, %v7544_v5  ;;  %v7549_v5 = vld [vmem:[#allocation8_spill] sm:$0xff] }
  0xcf   : > { %4898 = vmatprep.mubr.msk.f32.mxu0 %vm523_vm1, %v7545_v1 }
  0xd1   : > { %4675 = vmatmul.mubr.msk.f32.gmra.mrb[28].mxu1 %vm523_vm1, %v7546_v33  ;;  %v3426_v33 = vld [vmem:[%s7382_s3 + $0x10] sm:$0xff] }
  0xd2   : > { %4899 = vmatmul.mubr.msk.f32.gmra.mrb[28].mxu0 %vm523_vm1, %v7547_v3  ;;  %4677 = vmatprep.mubr.msk.f32.mxu1 %vm523_vm1, %v6309_v61  ;;  %v3424_v61 = vld [vmem:[%s7382_s3] sm:$0xff] }
  0xd3   : > { %4901 = vmatprep.mubr.msk.f32.mxu0 %vm523_vm1, %v6486_v38 }
  0xd5   : > { %4678 = vmatmul.mubr.msk.f32.gmra.mrb[30].mxu1 %vm523_vm1, %v6322_v58  ;;  %v3425_v58 = vld [vmem:[%s7382_s3 + $0x8] sm:$0xff] }
  0xd6   : > { %4902 = vmatmul.mubr.msk.f32.gmra.mrb[30].mxu0 %vm523_vm1, %v6497_v19  ;;  %4688 = vmatprep.mubr.msk.f32.mxu1 %vm523_vm1, %v7548_v48  ;;  %v5144_v34 = vpack.c.bf16 %v3425_v58, %v3424_v61  ;;  %v3427_v48 = vld [vmem:[%s7382_s3 + $0x18] sm:$0xff]  ;;  %v7553_v61 = vld [vmem:[#allocation11_spill] sm:$0xff]  ;;  %v7554_v58 = vld [vmem:[#allocation12_spill] sm:$0xff] }
  0xd7   : > { %4912 = vmatprep.mubr.msk.f32.mxu0 %vm523_vm1, %v7549_v5  ;;  %v5148_v62 = vpack.c.bf16 %v3427_v48, %v3426_v33 }
  0xd8   : > { %5145 = vmatprep.subr.bf16.mxu1 %v5144_v34 }
  0xd9   : > { %4689 = vmatmul.mubr.msk.f32.vlgmr.msra.gmra.mrb[0].mxu1 %vm523_vm1, %v7550_v9 }
  0xda   : > { %4913 = vmatmul.mubr.msk.f32.vlgmr.msra.gmra.mrb[0].mxu0 %vm523_vm1, %v7551_v44  ;;  %4691 = vmatprep.mubr.msk.f32.mxu1 %vm523_vm1, %v5614_v32  ;;  %v7555_v32 = vld [vmem:[#allocation13_spill] sm:$0xff] }
  0xdb   : > { %5139 = vmatpush3.bf16.msra.mxu0 %v6378_v21  ;;  %4915 = vmatprep.mubr.msk.f32.mxu0 %vm523_vm1, %v7552_v11  ;;  %v2565_v21 = vrot.slane %v6497_v19, 1 }
  0xdc   : > { %5141 = vmatprep.subr.bf16.mxu0 %v5140_v30  ;;  %5147 = vmatpush3.bf16.msra.mxu1 %v5144_v34 }
  0xdd   : > { %4692 = vmatmul.mubr.msk.f32.gmra.mrb[2].mxu1 %vm523_vm1, %v5622_v36  ;;  %5149 = vmatprep.subr.bf16.mxu1 %v5148_v62  ;;  %v7556_v36 = vld [vmem:[#allocation14_spill] sm:$0xff] }
  0xde   : > { %4916 = vmatmul.mubr.msk.f32.gmra.mrb[2].mxu0 %vm523_vm1, %v7553_v61  ;;  %4694 = vmatprep.mubr.msk.f32.mxu1 %vm523_vm1, %v5639_v45  ;;  %v7557_v45 = vld [vmem:[#allocation15_spill] sm:$0xff] }
  0xdf   : > { %4918 = vmatprep.mubr.msk.f32.mxu0 %vm523_vm1, %v7554_v58  ;;  %5143 = vmatpush3.bf16.msra.mxu0 %v5140_v30  ;;  %v7579_v30 = vld [vmem:[#allocation40_spill] sm:$0xff] }
  0xe0   : > { %5151 = vmatpush3.bf16.msra.mxu1 %v5148_v62  ;;  %v7577_v62 = vld [vmem:[#allocation38_spill] sm:$0xff] }
  0xe1   : > { %4695 = vmatmul.mubr.msk.f32.gmra.mrb[4].mxu1 %vm523_vm1, %v5642_v46  ;;  %v7559_v46 = vld [vmem:[#allocation17_spill] sm:$0xff] }
  0xe2   : > { %4919 = vmatmul.mubr.msk.f32.gmra.mrb[4].mxu0 %vm523_vm1, %v7555_v32  ;;  %4697 = vmatprep.mubr.msk.f32.mxu1 %vm523_vm1, %v5656_v51  ;;  %v7560_v51 = vld [vmem:[#allocation18_spill] sm:$0xff] }
  0xe3   : > { %4921 = vmatprep.mubr.msk.f32.mxu0 %vm523_vm1, %v7556_v36 }
  0xe5   : > { %4698 = vmatmul.mubr.msk.f32.gmra.mrb[6].mxu1 %vm523_vm1, %v5659_v52  ;;  %v7561_v52 = vld [vmem:[#allocation19_spill] sm:$0xff] }
  0xe6   : > { %4922 = vmatmul.mubr.msk.f32.gmra.mrb[6].mxu0 %vm523_vm1, %v7557_v45  ;;  %4700 = vmatprep.mubr.msk.f32.mxu1 %vm523_vm1, %v5690_v63  ;;  %v7562_v63 = vld [vmem:[#allocation20_spill] sm:$0xff] }
  0xe7   : > { %4924 = vmatprep.mubr.msk.f32.mxu0 %vm523_vm1, %v7558_v4 }
  0xe9   : > { %4701 = vmatmul.mubr.msk.f32.gmra.mrb[8].mxu1 %vm523_vm1, %v5693_v0  ;;  %v7563_v0 = vld [vmem:[#allocation21_spill] sm:$0xff] }
  0xea   : > { %4925 = vmatmul.mubr.msk.f32.gmra.mrb[8].mxu0 %vm523_vm1, %v7559_v46  ;;  %4703 = vmatprep.mubr.msk.f32.mxu1 %vm523_vm1, %v5717_v7  ;;  %v7564_v7 = vld [vmem:[#allocation22_spill] sm:$0xff] }
  0xeb   : > { %4927 = vmatprep.mubr.msk.f32.mxu0 %vm523_vm1, %v7560_v51 }
  0xed   : > { %4704 = vmatmul.mubr.msk.f32.gmra.mrb[10].mxu1 %vm523_vm1, %v5720_v8  ;;  %v7565_v8 = vld [vmem:[#allocation23_spill] sm:$0xff] }
  0xee   : > { %4928 = vmatmul.mubr.msk.f32.gmra.mrb[10].mxu0 %vm523_vm1, %v7561_v52  ;;  %4706 = vmatprep.mubr.msk.f32.mxu1 %vm523_vm1, %v5743_v15  ;;  %v7566_v15 = vld [vmem:[#allocation24_spill] sm:$0xff] }
  0xef   : > { %4930 = vmatprep.mubr.msk.f32.mxu0 %vm523_vm1, %v7562_v63 }
  0xf1   : > { %4707 = vmatmul.mubr.msk.f32.gmra.mrb[12].mxu1 %vm523_vm1, %v5746_v16  ;;  %v7567_v16 = vld [vmem:[#allocation25_spill] sm:$0xff] }
  0xf2   : > { %4931 = vmatmul.mubr.msk.f32.gmra.mrb[12].mxu0 %vm523_vm1, %v7563_v0  ;;  %4709 = vmatprep.mubr.msk.f32.mxu1 %vm523_vm1, %v5769_v27  ;;  %v7568_v27 = vld [vmem:[#allocation26_spill] sm:$0xff] }
  0xf3   : > { %4933 = vmatprep.mubr.msk.f32.mxu0 %vm523_vm1, %v7564_v7 }
  0xf5   : > { %4710 = vmatmul.mubr.msk.f32.gmra.mrb[14].mxu1 %vm523_vm1, %v5772_v29  ;;  %v7569_v29 = vld [vmem:[#allocation27_spill] sm:$0xff] }
  0xf6   : > { %4934 = vmatmul.mubr.msk.f32.gmra.mrb[14].mxu0 %vm523_vm1, %v7565_v8  ;;  %4712 = vmatprep.mubr.msk.f32.mxu1 %vm523_vm1, %v5795_v40  ;;  %v7570_v40 = vld [vmem:[#allocation28_spill] sm:$0xff] }
  0xf7   : > { %4936 = vmatprep.mubr.msk.f32.mxu0 %vm523_vm1, %v7566_v15 }
  0xf9   : > { %4713 = vmatmul.mubr.msk.f32.gmra.mrb[16].mxu1 %vm523_vm1, %v5798_v42  ;;  %v7571_v42 = vld [vmem:[#allocation29_spill] sm:$0xff] }
  0xfa   : > { %4937 = vmatmul.mubr.msk.f32.gmra.mrb[16].mxu0 %vm523_vm1, %v7567_v16  ;;  %4715 = vmatprep.mubr.msk.f32.mxu1 %vm523_vm1, %v5821_v57  ;;  %v7572_v57 = vld [vmem:[#allocation30_spill] sm:$0xff] }
  0xfb   : > { %4939 = vmatprep.mubr.msk.f32.mxu0 %vm523_vm1, %v7568_v27 }
  0xfd   : > { %4716 = vmatmul.mubr.msk.f32.gmra.mrb[18].mxu1 %vm523_vm1, %v5824_v59  ;;  %v7573_v59 = vld [vmem:[#allocation31_spill] sm:$0xff] }
  0xfe   : > { %4940 = vmatmul.mubr.msk.f32.gmra.mrb[18].mxu0 %vm523_vm1, %v7569_v29  ;;  %4718 = vmatprep.mubr.msk.f32.mxu1 %vm523_vm1, %v5847_v13  ;;  %v7574_v13 = vld [vmem:[#allocation32_spill] sm:$0xff] }
  0xff   : > { %4942 = vmatprep.mubr.msk.f32.mxu0 %vm523_vm1, %v7570_v40 }
 0x101   : > { %4719 = vmatmul.mubr.msk.f32.gmra.mrb[20].mxu1 %vm523_vm1, %v5850_v18  ;;  %v7575_v18 = vld [vmem:[#allocation35_spill] sm:$0xff] }
 0x102   : > { %4943 = vmatmul.mubr.msk.f32.gmra.mrb[20].mxu0 %vm523_vm1, %v7571_v42  ;;  %4721 = vmatprep.mubr.msk.f32.mxu1 %vm523_vm1, %v5876_v53  ;;  %v7576_v53 = vld [vmem:[#allocation36_spill] sm:$0xff] }
 0x103   : > { %4945 = vmatprep.mubr.msk.f32.mxu0 %vm523_vm1, %v7572_v57 }
 0x105   : > { %4722 = vmatmul.mubr.msk.f32.gmra.mrb[22].mxu1 %vm523_vm1, %v5879_v2  ;;  %v2564_v2 = vrot.slane %v6486_v38, 1 }
 0x106   : > { %4946 = vmatmul.mubr.msk.f32.gmra.mrb[22].mxu0 %vm523_vm1, %v7573_v59  ;;  %4724 = vmatprep.mubr.msk.f32.mxu1 %vm523_vm1, %v5907_v10  ;;  %v6633_v10 = vld [vmem:[%s5579_s9 + $0x1a8] sm:$0x3]  ;;  %s6840_s9 = sshll.u32 %s7595_s25, 8 }
 0x107   : > { %4948 = vmatprep.mubr.msk.f32.mxu0 %vm523_vm1, %v7574_v13  ;;  %v2566_v9 = vsel %vm442_vm0, %v2564_v2, %v2565_v21  ;;  %s6851_s10 = scalar_lea.vmem %s7384_s5, %s6840_s9  ;;  %s7045_s14 = scalar_lea.vmem %s7386_s7, %s6840_s9 }
 0x108   : > { %s7278_s17 = scalar_lea.vmem %s7385_s6, %s6840_s9 }
 0x109   : > { %4725 = vmatmul.mubr.msk.f32.gmra.mrb[24].mxu1 %vm523_vm1, %v5910_v24  ;;  %v7578_v24 = vld [vmem:[#allocation39_spill] sm:$0xff] }
 0x10a   : > { %4949 = vmatmul.mubr.msk.f32.gmra.mrb[24].mxu0 %vm523_vm1, %v7575_v18  ;;  %4727 = vmatprep.mubr.msk.f32.mxu1 %vm523_vm1, %v5934_v41  ;;  %v2567_v41 = vrot.slane %v6633_v10, 1 }
 0x10b   : > { %4951 = vmatprep.mubr.msk.f32.mxu0 %vm523_vm1, %v7576_v53 }
 0x10d   : > { %4728 = vmatmul.mubr.msk.f32.gmra.mrb[26].mxu1 %vm523_vm1, %v5937_v37  ;;  %v7580_v37 = vld [vmem:[#allocation6_spill] sm:$0xff] }
 0x10e   : > { %4952 = vmatmul.mubr.msk.f32.gmra.mrb[26].mxu0 %vm523_vm1, %v7577_v62  ;;  %4730 = vmatprep.mubr.msk.f32.mxu1 %vm523_vm1, %v5960_v60  ;;  %v2568_v60 = vsel %vm442_vm0, %v2565_v21, %v2567_v41 }
 0x10f   : > { %4954 = vmatprep.mubr.msk.f32.mxu0 %vm523_vm1, %v7578_v24 }
 0x111   : > { %4731 = vmatmul.mubr.msk.f32.gmra.mrb[28].mxu1 %vm523_vm1, %v5963_v43  ;;  %v7581_v43 = vld [vmem:[#allocation7_spill] sm:$0xff] }
 0x112   : > { %4955 = vmatmul.mubr.msk.f32.gmra.mrb[28].mxu0 %vm523_vm1, %v7579_v30  ;;  %4733 = vmatprep.mubr.msk.f32.mxu1 %vm523_vm1, %v7545_v1 }
 0x113   : > { %4957 = vmatprep.mubr.msk.f32.mxu0 %vm523_vm1, %v2566_v9 }
 0x115   : > { %4734 = vmatmul.mubr.msk.f32.gmra.mrb[30].mxu1 %vm523_vm1, %v7547_v3 }
 0x116   : > { %4958 = vmatmul.mubr.msk.f32.gmra.mrb[30].mxu0 %vm523_vm1, %v2568_v60  ;;  %5024 = vmatprep.mubr.msk.f32.mxu1 %vm523_vm1, %v7580_v37 }
 0x117   : > { %4968 = vmatprep.mubr.msk.f32.mxu0 %vm523_vm1, %v6068_v49  ;;  %v7582_v49 = vld [vmem:[#allocation43_spill] sm:$0xff] }
 0x119   : > { %5025 = vmatmul.mubr.msk.f32.vlgmr.msra.gmra.mrb[32].mxu1 %vm523_vm1, %v7581_v43 }
 0x11a   : > { %4969 = vmatmul.mubr.msk.f32.vlgmr.msra.gmra.mrb[0].mxu0 %vm523_vm1, %v6094_v50  ;;  %5027 = vmatprep.mubr.msk.f32.mxu1 %vm523_vm1, %v7549_v5  ;;  %v7583_v50 = vld [vmem:[#allocation44_spill] sm:$0xff] }
 0x11b   : > { %4971 = vmatprep.mubr.msk.f32.mxu0 %vm523_vm1, %v6098_v31  ;;  %v7584_v31 = vld [vmem:[#allocation45_spill] sm:$0xff] }
 0x11d   : > { %5028 = vmatmul.mubr.msk.f32.gmra.mrb[34].mxu1 %vm523_vm1, %v7551_v44 }
 0x11e   : > { %4972 = vmatmul.mubr.msk.f32.gmra.mrb[2].mxu0 %vm523_vm1, %v6116_v47  ;;  %5030 = vmatprep.mubr.msk.f32.mxu1 %vm523_vm1, %v7552_v11  ;;  %v7585_v47 = vld [vmem:[#allocation46_spill] sm:$0xff] }
 0x11f   : > { %4974 = vmatprep.mubr.msk.f32.mxu0 %vm523_vm1, %v6120_v35  ;;  %v7586_v35 = vld [vmem:[#allocation47_spill] sm:$0xff] }
 0x121   : > { %5031 = vmatmul.mubr.msk.f32.gmra.mrb[36].mxu1 %vm523_vm1, %v7553_v61 }
 0x122   : > { %4975 = vmatmul.mubr.msk.f32.gmra.mrb[4].mxu0 %vm523_vm1, %v6135_v20  ;;  %5033 = vmatprep.mubr.msk.f32.mxu1 %vm523_vm1, %v7554_v58  ;;  %v7587_v20 = vld [vmem:[#allocation48_spill] sm:$0xff] }
 0x123   : > { %4977 = vmatprep.mubr.msk.f32.mxu0 %vm523_vm1, %v6139_v56  ;;  %v7588_v56 = vld [vmem:[#allocation49_spill] sm:$0xff] }
 0x125   : > { %5034 = vmatmul.mubr.msk.f32.gmra.mrb[38].mxu1 %vm523_vm1, %v7555_v32 }
 0x126   : > { %4978 = vmatmul.mubr.msk.f32.gmra.mrb[6].mxu0 %vm523_vm1, %v6152_v6  ;;  %5036 = vmatprep.mubr.msk.f32.mxu1 %vm523_vm1, %v7556_v36  ;;  %v7589_v6 = vld [vmem:[#allocation50_spill] sm:$0xff] }
 0x127   : > { %4980 = vmatprep.mubr.msk.f32.mxu0 %vm523_vm1, %v6156_v23  ;;  %v7590_v23 = vld [vmem:[#allocation51_spill] sm:$0xff] }
 0x129   : > { %5037 = vmatmul.mubr.msk.f32.gmra.mrb[40].mxu1 %vm523_vm1, %v7557_v45 }
 0x12a   : > { %4981 = vmatmul.mubr.msk.f32.gmra.mrb[8].mxu0 %vm523_vm1, %v6169_v14  ;;  %5039 = vmatprep.mubr.msk.f32.mxu1 %vm523_vm1, %v7558_v4  ;;  %v2830_v14 = vrot.slane %v6486_v38, 2 }
 0x12b   : > { %4983 = vmatprep.mubr.msk.f32.mxu0 %vm523_vm1, %v6173_v55  ;;  %v2831_v55 = vrot.slane %v6497_v19, 2 }
 0x12d   : > { %5040 = vmatmul.mubr.msk.f32.gmra.mrb[42].mxu1 %vm523_vm1, %v7559_v46 }
 0x12e   : > { %4984 = vmatmul.mubr.msk.f32.gmra.mrb[10].mxu0 %vm523_vm1, %v6186_v25  ;;  %5042 = vmatprep.mubr.msk.f32.mxu1 %vm523_vm1, %v7560_v51  ;;  %v7591_v25 = vld [vmem:[#allocation52_spill] sm:$0xff] }
 0x12f   : > { %4986 = vmatprep.mubr.msk.f32.mxu0 %vm523_vm1, %v6190_v28  ;;  %v7592_v28 = vld [vmem:[#allocation37_spill] sm:$0xff] }
 0x131   : > { %5043 = vmatmul.mubr.msk.f32.gmra.mrb[44].mxu1 %vm523_vm1, %v7561_v52 }
 0x132   : > { %4987 = vmatmul.mubr.msk.f32.gmra.mrb[12].mxu0 %vm523_vm1, %v6203_v39  ;;  %5045 = vmatprep.mubr.msk.f32.mxu1 %vm523_vm1, %v7562_v63  ;;  %v2833_v39 = vrot.slane %v6633_v10, 2 }
 0x133   : > { %4989 = vmatprep.mubr.msk.f32.mxu0 %vm523_vm1, %v6207_v17  ;;  %v2832_v17 = vsel %vm1102_vm2, %v2830_v14, %v2831_v55 }
 0x135   : > { %5046 = vmatmul.mubr.msk.f32.gmra.mrb[46].mxu1 %vm523_vm1, %v7563_v0 }
 0x136   : > { %4990 = vmatmul.mubr.msk.f32.gmra.mrb[14].mxu0 %vm523_vm1, %v6220_v54  ;;  %5048 = vmatprep.mubr.msk.f32.mxu1 %vm523_vm1, %v7564_v7  ;;  %v7593_v54 = vld [vmem:[#allocation2_spill] sm:$0xff] }
 0x137   : > { %4992 = vmatprep.mubr.msk.f32.mxu0 %vm523_vm1, %v7538_v22 }
 0x139   : > { %5049 = vmatmul.mubr.msk.f32.gmra.mrb[48].mxu1 %vm523_vm1, %v7565_v8 }
 0x13a   : > { %4993 = vmatmul.mubr.msk.f32.gmra.mrb[16].mxu0 %vm523_vm1, %v6237_v12  ;;  %5051 = vmatprep.mubr.msk.f32.mxu1 %vm523_vm1, %v7566_v15  ;;  %v2834_v12 = vsel %vm1102_vm2, %v2831_v55, %v2833_v39 }
 0x13b   : > { %4995 = vmatprep.mubr.msk.f32.mxu0 %vm523_vm1, %v7582_v49 }
 0x13d   : > { %5052 = vmatmul.mubr.msk.f32.gmra.mrb[50].mxu1 %vm523_vm1, %v7567_v16 }
 0x13e   : > { %4996 = vmatmul.mubr.msk.f32.gmra.mrb[18].mxu0 %vm523_vm1, %v7583_v50  ;;  %5054 = vmatprep.mubr.msk.f32.mxu1 %vm523_vm1, %v7568_v27 }
 0x13f   : > { %4998 = vmatprep.mubr.msk.f32.mxu0 %vm523_vm1, %v7584_v31 }
 0x141   : > { %5055 = vmatmul.mubr.msk.f32.gmra.mrb[52].mxu1 %vm523_vm1, %v7569_v29 }
 0x142   : > { %4999 = vmatmul.mubr.msk.f32.gmra.mrb[20].mxu0 %vm523_vm1, %v7585_v47  ;;  %5057 = vmatprep.mubr.msk.f32.mxu1 %vm523_vm1, %v7570_v40 }
 0x143   : > { %5001 = vmatprep.mubr.msk.f32.mxu0 %vm523_vm1, %v7586_v35 }
 0x145   : > { %5058 = vmatmul.mubr.msk.f32.gmra.mrb[54].mxu1 %vm523_vm1, %v7571_v42 }
 0x146   : > { %5002 = vmatmul.mubr.msk.f32.gmra.mrb[22].mxu0 %vm523_vm1, %v7587_v20  ;;  %5060 = vmatprep.mubr.msk.f32.mxu1 %vm523_vm1, %v7572_v57 }
 0x147   : > { %5004 = vmatprep.mubr.msk.f32.mxu0 %vm523_vm1, %v7588_v56 }
 0x149   : > { %5061 = vmatmul.mubr.msk.f32.gmra.mrb[56].mxu1 %vm523_vm1, %v7573_v59 }
 0x14a   : > { %5005 = vmatmul.mubr.msk.f32.gmra.mrb[24].mxu0 %vm523_vm1, %v7589_v6  ;;  %5063 = vmatprep.mubr.msk.f32.mxu1 %vm523_vm1, %v7574_v13  ;;  %v6845_v13 = vld [vmem:[%s7381_s2] ss:$0 sm:$0xff] }
 0x14b   : > { %5007 = vmatprep.mubr.msk.f32.mxu0 %vm523_vm1, %v7590_v23 }
 0x14d   : > { %5064 = vmatmul.mubr.msk.f32.gmra.mrb[58].mxu1 %vm523_vm1, %v7575_v18 }
 0x14e   : > { %5008 = vmatmul.mubr.msk.f32.gmra.mrb[26].mxu0 %vm523_vm1, %v7591_v25  ;;  %5066 = vmatprep.mubr.msk.f32.mxu1 %vm523_vm1, %v7576_v53 }
 0x14f   : > { %5010 = vmatprep.mubr.msk.f32.mxu0 %vm523_vm1, %v7592_v28 }
 0x151   : > { %5067 = vmatmul.mubr.msk.f32.gmra.mrb[60].mxu1 %vm523_vm1, %v7577_v62 }
 0x152   : > { %5011 = vmatmul.mubr.msk.f32.gmra.mrb[28].mxu0 %vm523_vm1, %v7593_v54  ;;  %5069 = vmatprep.mubr.msk.f32.mxu1 %vm523_vm1, %v7578_v24 }
 0x153   : > { %5013 = vmatprep.mubr.msk.f32.mxu0 %vm523_vm1, %v2832_v17 }
 0x155   : > { %5070 = vmatmul.mubr.msk.f32.gmra.mrb[62].mxu1 %vm523_vm1, %v7579_v30 }
 0x156   : > { %5014 = vmatmul.mubr.msk.f32.gmra.mrb[30].mxu0 %vm523_vm1, %v2834_v12 }
 0x1ac   : > { %v4690_v44 = vpop.f32.mrb[0].mxu1 }
 0x1ad   : > { %v1576_v22 = vpop.f32.mrb[1].mxu1 }
 0x1b0   : > { %v4693_v11 = vpop.f32.mrb[2].mxu1 }
 0x1b1   : > { %v1586_v34 = vpop.f32.mrb[3].mxu1 }
 0x1b4   : > { %v4696_v5 = vpop.f32.mrb[4].mxu1 }
 0x1b5   : > { %v1596_v1 = vpop.f32.mrb[5].mxu1 }
 0x1b8   : > { %v6787_v38 = vpop.f32.mrb[6].mxu1 }
 0x1b9   : > { %v6789_v33 = vpop.f32.mrb[7].mxu1 }
 0x1bc   : > { %v6791_v3 = vpop.f32.mrb[8].mxu1 }
 0x1bd   : > { %v6793_v19 = vpop.f32.mrb[9].mxu1 }
 0x1c0   : > { %v6795_v26 = vpop.f32.mrb[10].mxu1 }
 0x1c1   : > { %v6797_v48 = vpop.f32.mrb[11].mxu1 }
 0x1c4   : > { %v6799_v61 = vpop.f32.mrb[12].mxu1 }
 0x1c5   : > { %v6801_v58 = vpop.f32.mrb[13].mxu1 }
 0x1c8   : > { %v6803_v32 = vpop.f32.mrb[14].mxu1 }
 0x1c9   : > { %v6805_v36 = vpop.f32.mrb[15].mxu1 }
 0x1cc   : > { %v6807_v45 = vpop.f32.mrb[16].mxu1 }
 0x1cd   : > { %v6809_v4 = vpop.f32.mrb[17].mxu1 }
 0x1d0   : > { %v6811_v46 = vpop.f32.mrb[18].mxu1 }
 0x1d1   : > { %v6813_v51 = vpop.f32.mrb[19].mxu1 }
 0x1d4   : > { %v6815_v52 = vpop.f32.mrb[20].mxu1 }
 0x1d5   : > { %v6817_v63 = vpop.f32.mrb[21].mxu1 }
 0x1d8   : > { %v6819_v0 = vpop.f32.mrb[22].mxu1 }
 0x1d9   : > { %v6821_v7 = vpop.f32.mrb[23].mxu1 }
 0x1dc   : > { %v6823_v8 = vpop.f32.mrb[24].mxu1 }
 0x1dd   : > { %v6825_v15 = vpop.f32.mrb[25].mxu1 }
 0x1e0   : > { %v6827_v16 = vpop.f32.mrb[26].mxu1 }
 0x1e1   : > { %v6829_v27 = vpop.f32.mrb[27].mxu1 }
 0x1e4   : > { %v6831_v29 = vpop.f32.mrb[28].mxu1 }
 0x1e5   : > { %v6833_v40 = vpop.f32.mrb[29].mxu1 }
 0x1e8   : > { %v6835_v42 = vpop.f32.mrb[30].mxu1 }
 0x1e9   : > { %v6837_v57 = vpop.f32.mrb[31].mxu1 }
 0x1ed   : > { %v4970_v59 = vpop.f32.mrb[0].mxu0 }
 0x1ee   : > { %v5152_v18 = vadd.f32 %v4970_v59, %v4690_v44  ;;  %v2905_v53 = vpop.f32.mrb[1].mxu0 }
 0x1ef   : > { %v5153_v2 = vadd.f32 %v2905_v53, %v1576_v22 }
 0x1f0   : > { %v6854_v21 = vadd.f32 %v5152_v18, %v6845_v13 }
 0x1f1   : > { %v6857_v10 = vadd.f32 %v5153_v2, %v6845_v13  ;;  %v4973_v62 = vpop.f32.mrb[2].mxu0 }
 0x1f2   : > { %3137 = vst.msk [vmem:[%s6851_s10 + $0x8] sm:$0xff] %vm3135_vm3, %v6854_v21  ;;  %v5154_v24 = vadd.f32 %v4973_v62, %v4693_v11  ;;  %v2915_v41 = vpop.f32.mrb[3].mxu0  ;;  %v3169_v9 = vmul.f32 %v6854_v21, %v6854_v21 }
 0x1f3   : > { %3136 = vst.msk [vmem:[%s6851_s10] sm:$0xff] %vm3135_vm3, %v6857_v10  ;;  %v5155_v30 = vadd.f32 %v2915_v41, %v1586_v34  ;;  %v3168_v43 = vmul.f32 %v6857_v10, %v6857_v10 }
 0x1f4   : > { %v6868_v60 = vadd.f32 %v5154_v24, %v6845_v13  ;;  %v3203_v37 = vsel %vm3135_vm3, %v3169_v9, 0.0 }
 0x1f5   : > { %v6874_v49 = vadd.f32 %v5155_v30, %v6845_v13  ;;  %v4976_v50 = vpop.f32.mrb[4].mxu0  ;;  %3204 = vadd.xlane.f32.xlu0 %v3203_v37  ;;  %v3200_v6 = vsel %vm3135_vm3, %v3168_v43, 0.0 }
 0x1f6   : > { %3139 = vst.msk [vmem:[%s6851_s10 + $0x18] sm:$0xff] %vm3135_vm3, %v6868_v60  ;;  %v5156_v31 = vadd.f32 %v4976_v50, %v4696_v5  ;;  %v2925_v47 = vpop.f32.mrb[5].mxu0  ;;  %v3171_v35 = vmul.f32 %v6868_v60, %v6868_v60 }
 0x1f7   : > { %3138 = vst.msk [vmem:[%s6851_s10 + $0x10] sm:$0xff] %vm3135_vm3, %v6874_v49  ;;  %v5157_v20 = vadd.f32 %v2925_v47, %v1596_v1  ;;  %v3170_v14 = vmul.f32 %v6874_v49, %v6874_v49 }
 0x1f8   : > { %v6885_v56 = vadd.f32 %v5156_v31, %v6845_v13  ;;  %v3209_v23 = vsel %vm3135_vm3, %v3171_v35, 0.0 }
 0x1f9   : > { %v6892_v55 = vadd.f32 %v5157_v20, %v6845_v13  ;;  %v4979_v25 = vpop.f32.mrb[6].mxu0  ;;  %3201 = vadd.xlane.f32.xlu0 %v3200_v6  ;;  %3210 = vadd.xlane.f32.xlu1 %v3209_v23  ;;  %v3206_v44 = vsel %vm3135_vm3, %v3170_v14, 0.0 }
 0x1fa   : > { %3141 = vst.msk [vmem:[%s6851_s10 + $0x28] sm:$0xff] %vm3135_vm3, %v6885_v56  ;;  %v5158_v28 = vadd.f32 %v4979_v25, %v6787_v38  ;;  %v2935_v39 = vpop.f32.mrb[7].mxu0  ;;  %v3173_v22 = vmul.f32 %v6885_v56, %v6885_v56 }
 0x1fb   : > { %3140 = vst.msk [vmem:[%s6851_s10 + $0x20] sm:$0xff] %vm3135_vm3, %v6892_v55  ;;  %v5159_v17 = vadd.f32 %v2935_v39, %v6789_v33  ;;  %v3172_v54 = vmul.f32 %v6892_v55, %v6892_v55 }
 0x1fc   : > { %v6905_v12 = vadd.f32 %v5158_v28, %v6845_v13  ;;  %v3215_v53 = vsel %vm3135_vm3, %v3173_v22, 0.0 }
 0x1fd   : > { %v6911_v11 = vadd.f32 %v5159_v17, %v6845_v13  ;;  %v4982_v34 = vpop.f32.mrb[8].mxu0  ;;  %3207 = vadd.xlane.f32.xlu1 %v3206_v44  ;;  %v3212_v5 = vsel %vm3135_vm3, %v3172_v54, 0.0 }
 0x1fe   : > { %3143 = vst.msk [vmem:[%s6851_s10 + $0x38] sm:$0xff] %vm3135_vm3, %v6905_v12  ;;  %v5160_v1 = vadd.f32 %v4982_v34, %v6791_v3  ;;  %v2945_v38 = vpop.f32.mrb[9].mxu0  ;;  %3213 = vadd.xlane.f32.xlu0 %v3212_v5  ;;  %v3175_v2 = vmul.f32 %v6905_v12, %v6905_v12 }
 0x1ff   : > { %3142 = vst.msk [vmem:[%s6851_s10 + $0x30] sm:$0xff] %vm3135_vm3, %v6911_v11  ;;  %v5161_v33 = vadd.f32 %v2945_v38, %v6793_v19  ;;  %v3174_v59 = vmul.f32 %v6911_v11, %v6911_v11 }
 0x200   : > { %v6925_v18 = vadd.f32 %v5160_v1, %v6845_v13  ;;  %v3221_v43 = vsel %vm3135_vm3, %v3175_v2, 0.0 }
 0x201   : > { %v6931_v3 = vadd.f32 %v5161_v33, %v6845_v13  ;;  %v4985_v62 = vpop.f32.mrb[10].mxu0  ;;  %3216 = vadd.xlane.f32.xlu1 %v3215_v53  ;;  %v3218_v24 = vsel %vm3135_vm3, %v3174_v59, 0.0 }
 0x202   : > { %3145 = vst.msk [vmem:[%s6851_s10 + $0x48] sm:$0xff] %vm3135_vm3, %v6925_v18  ;;  %v5162_v19 = vadd.f32 %v4985_v62, %v6795_v26  ;;  %v2955_v41 = vpop.f32.mrb[11].mxu0  ;;  %3219 = vadd.xlane.f32.xlu0 %v3218_v24  ;;  %v3177_v50 = vmul.f32 %v6925_v18, %v6925_v18 }
 0x203   : > { %3144 = vst.msk [vmem:[%s6851_s10 + $0x40] sm:$0xff] %vm3135_vm3, %v6931_v3  ;;  %v5163_v9 = vadd.f32 %v2955_v41, %v6797_v48  ;;  %v3176_v30 = vmul.f32 %v6931_v3, %v6931_v3 }
 0x204   : > { %v6945_v37 = vadd.f32 %v5162_v19, %v6845_v13  ;;  %v3227_v14 = vsel %vm3135_vm3, %v3177_v50, 0.0 }
 0x205   : > { %v6951_v26 = vadd.f32 %v5163_v9, %v6845_v13  ;;  %v4988_v31 = vpop.f32.mrb[12].mxu0  ;;  %3222 = vadd.xlane.f32.xlu1 %v3221_v43  ;;  %v3224_v47 = vsel %vm3135_vm3, %v3176_v30, 0.0  ;;  %v5026_v30 = vpop.f32.mrb[32].mxu1 }
 0x206   : > { %3147 = vst.msk [vmem:[%s6851_s10 + $0x58] sm:$0xff] %vm3135_vm3, %v6945_v37  ;;  %v5164_v48 = vadd.f32 %v4988_v31, %v6799_v61  ;;  %v2965_v35 = vpop.f32.mrb[13].mxu0  ;;  %3225 = vadd.xlane.f32.xlu0 %v3224_v47  ;;  %v3179_v25 = vmul.f32 %v6945_v37, %v6945_v37  ;;  %v7028_v47 = vld [vmem:[%s7383_s4] ss:$0 sm:$0xff] }
 0x207   : > { %3146 = vst.msk [vmem:[%s6851_s10 + $0x50] sm:$0xff] %vm3135_vm3, %v6951_v26  ;;  %v5165_v20 = vadd.f32 %v2965_v35, %v6801_v58  ;;  %v3178_v6 = vmul.f32 %v6951_v26, %v6951_v26 }
 0x208   : > { %v6965_v23 = vadd.f32 %v5164_v48, %v6845_v13  ;;  %v3233_v34 = vsel %vm3135_vm3, %v3179_v25, 0.0 }
 0x209   : > { %v6971_v61 = vadd.f32 %v5165_v20, %v6845_v13  ;;  %v4991_v28 = vpop.f32.mrb[14].mxu0  ;;  %3228 = vadd.xlane.f32.xlu1 %v3227_v14  ;;  %v3230_v39 = vsel %vm3135_vm3, %v3178_v6, 0.0 }
 0x20a   : > { %3149 = vst.msk [vmem:[%s6851_s10 + $0x68] sm:$0xff] %vm3135_vm3, %v6965_v23  ;;  %v5166_v58 = vadd.f32 %v4991_v28, %v6803_v32  ;;  %v2975_v17 = vpop.f32.mrb[15].mxu0  ;;  %3231 = vadd.xlane.f32.xlu0 %v3230_v39  ;;  %v3181_v5 = vmul.f32 %v6965_v23, %v6965_v23 }
 0x20b   : > { %3148 = vst.msk [vmem:[%s6851_s10 + $0x60] sm:$0xff] %vm3135_vm3, %v6971_v61  ;;  %v5167_v54 = vadd.f32 %v2975_v17, %v6805_v36  ;;  %v3180_v44 = vmul.f32 %v6971_v61, %v6971_v61 }
 0x20c   : > { %v6985_v22 = vadd.f32 %v5166_v58, %v6845_v13  ;;  %v3239_v24 = vsel %vm3135_vm3, %v3181_v5, 0.0 }
 0x20d   : > { %v6991_v32 = vadd.f32 %v5167_v54, %v6845_v13  ;;  %v4994_v1 = vpop.f32.mrb[16].mxu0  ;;  %3234 = vadd.xlane.f32.xlu1 %v3233_v34  ;;  %v3236_v38 = vsel %vm3135_vm3, %v3180_v44, 0.0 }
 0x20e   : > { %3151 = vst.msk [vmem:[%s6851_s10 + $0x78] sm:$0xff] %vm3135_vm3, %v6985_v22  ;;  %v5168_v36 = vadd.f32 %v4994_v1, %v6807_v45  ;;  %v2985_v33 = vpop.f32.mrb[17].mxu0  ;;  %3237 = vadd.xlane.f32.xlu0 %v3236_v38  ;;  %v3183_v2 = vmul.f32 %v6985_v22, %v6985_v22 }
 0x20f   : > { %3150 = vst.msk [vmem:[%s6851_s10 + $0x70] sm:$0xff] %vm3135_vm3, %v6991_v32  ;;  %v5169_v59 = vadd.f32 %v2985_v33, %v6809_v4  ;;  %v3182_v53 = vmul.f32 %v6991_v32, %v6991_v32 }
 0x210   : > { %v7007_v62 = vadd.f32 %v5168_v36, %v6845_v13  ;;  %v3245_v50 = vsel %vm3135_vm3, %v3183_v2, 0.0 }
 0x211   : > { %v7011_v45 = vadd.f32 %v5169_v59, %v6845_v13  ;;  %v4997_v19 = vpop.f32.mrb[18].mxu0  ;;  %3240 = vadd.xlane.f32.xlu1 %v3239_v24  ;;  %v3242_v41 = vsel %vm3135_vm3, %v3182_v53, 0.0 }
 0x212   : > { %3153 = vst.msk [vmem:[%s6851_s10 + $0x88] sm:$0xff] %vm3135_vm3, %v7007_v62  ;;  %v5170_v4 = vadd.f32 %v4997_v19, %v6811_v46  ;;  %v2995_v9 = vpop.f32.mrb[19].mxu0  ;;  %3243 = vadd.xlane.f32.xlu0 %v3242_v41  ;;  %v3501_v46 = vpop.f32.mrb[33].mxu1  ;;  %v3185_v35 = vmul.f32 %v7007_v62, %v7007_v62 }
 0x213   : > { %3152 = vst.msk [vmem:[%s6851_s10 + $0x80] sm:$0xff] %vm3135_vm3, %v7011_v45  ;;  %v5171_v43 = vadd.f32 %v2995_v9, %v6813_v51  ;;  %v3184_v31 = vmul.f32 %v7011_v45, %v7011_v45  ;;  %v3507_v51 = vadd.f32 %v5026_v30, %v7028_v47  ;;  %v3502_v20 = vadd.f32 %v7028_v47, %v3501_v46  ;;  %v5029_v58 = vpop.f32.mrb[34].mxu1 }
 0x214   : > { %v7031_v48 = vadd.f32 %v5170_v4, %v6845_v13  ;;  %v3511_v44 = vpop.f32.mrb[35].mxu1  ;;  %v3251_v5 = vsel %vm3135_vm3, %v3185_v35, 0.0  ;;  %v3517_v1 = vadd.f32 %v5029_v58, %v7028_v47 }
 0x215   : > { %v7038_v6 = vadd.f32 %v5171_v43, %v6845_v13  ;;  %v5000_v14 = vpop.f32.mrb[20].mxu0  ;;  %3246 = vadd.xlane.f32.xlu1 %v3245_v50  ;;  %v3248_v25 = vsel %vm3135_vm3, %v3184_v31, 0.0  ;;  %3661 = vst.msk [vmem:[%s7045_s14 + $0x8] sm:$0xff] %vm523_vm1, %v3507_v51  ;;  %3660 = vst.msk [vmem:[%s7045_s14] sm:$0xff] %vm523_vm1, %v3502_v20  ;;  %v3512_v38 = vadd.f32 %v7028_v47, %v3511_v44  ;;  %v5032_v2 = vpop.f32.mrb[36].mxu1 }
 0x216   : > { %3155 = vst.msk [vmem:[%s6851_s10 + $0x98] sm:$0xff] %vm3135_vm3, %v7031_v48  ;;  %v5172_v28 = vadd.f32 %v5000_v14, %v6815_v52  ;;  %v3005_v39 = vpop.f32.mrb[21].mxu0  ;;  %3249 = vadd.xlane.f32.xlu0 %v3248_v25  ;;  %v3187_v52 = vmul.f32 %v7031_v48, %v7031_v48  ;;  %v3521_v41 = vpop.f32.mrb[37].mxu1  ;;  %v3527_v30 = vadd.f32 %v5032_v2, %v7028_v47 }
 0x217   : > { %3154 = vst.msk [vmem:[%s6851_s10 + $0x90] sm:$0xff] %vm3135_vm3, %v7038_v6  ;;  %v5173_v17 = vadd.f32 %v3005_v39, %v6817_v63  ;;  %v3186_v54 = vmul.f32 %v7038_v6, %v7038_v6  ;;  %v3522_v43 = vadd.f32 %v7028_v47, %v3521_v41  ;;  %v5035_v51 = vpop.f32.mrb[38].mxu1 }
 0x218   : > { %v7064_v34 = vadd.f32 %v5172_v28, %v6845_v13  ;;  %3663 = vst.msk [vmem:[%s7045_s14 + $0x18] sm:$0xff] %vm523_vm1, %v3517_v1  ;;  %3662 = vst.msk [vmem:[%s7045_s14 + $0x10] sm:$0xff] %vm523_vm1, %v3512_v38  ;;  %v3257_v19 = vsel %vm3135_vm3, %v3187_v52, 0.0  ;;  %v3531_v25 = vpop.f32.mrb[39].mxu1  ;;  %v3537_v58 = vadd.f32 %v5035_v51, %v7028_v47 }
 0x219   : > { %v7070_v63 = vadd.f32 %v5173_v17, %v6845_v13  ;;  %v5003_v36 = vpop.f32.mrb[22].mxu0  ;;  %3252 = vadd.xlane.f32.xlu1 %v3251_v5  ;;  %v3254_v33 = vsel %vm3135_vm3, %v3186_v54, 0.0  ;;  %3665 = vst.msk [vmem:[%s7045_s14 + $0x28] sm:$0xff] %vm523_vm1, %v3527_v30  ;;  %3664 = vst.msk [vmem:[%s7045_s14 + $0x20] sm:$0xff] %vm523_vm1, %v3522_v43  ;;  %v3532_v17 = vadd.f32 %v7028_v47, %v3531_v25  ;;  %v5038_v1 = vpop.f32.mrb[40].mxu1 }
 0x21a   : > { %3157 = vst.msk [vmem:[%s6851_s10 + $0xa8] sm:$0xff] %vm3135_vm3, %v7064_v34  ;;  %v5174_v59 = vadd.f32 %v5003_v36, %v6819_v0  ;;  %v3015_v53 = vpop.f32.mrb[23].mxu0  ;;  %3255 = vadd.xlane.f32.xlu0 %v3254_v33  ;;  %v3189_v9 = vmul.f32 %v7064_v34, %v7064_v34  ;;  %v3541_v33 = vpop.f32.mrb[41].mxu1  ;;  %v3547_v2 = vadd.f32 %v5038_v1, %v7028_v47 }
 0x21b   : > { %3156 = vst.msk [vmem:[%s6851_s10 + $0xa0] sm:$0xff] %vm3135_vm3, %v7070_v63  ;;  %v5175_v24 = vadd.f32 %v3015_v53, %v6821_v7  ;;  %v3188_v0 = vmul.f32 %v7070_v63, %v7070_v63  ;;  %v5041_v30 = vpop.f32.mrb[42].mxu1 }
 0x21c   : > { %v7089_v4 = vadd.f32 %v5174_v59, %v6845_v13  ;;  %v3263_v39 = vsel %vm3135_vm3, %v3189_v9, 0.0  ;;  %3667 = vst.msk [vmem:[%s7045_s14 + $0x38] sm:$0xff] %vm523_vm1, %v3537_v58  ;;  %3666 = vst.msk [vmem:[%s7045_s14 + $0x30] sm:$0xff] %vm523_vm1, %v3532_v17  ;;  %v3557_v51 = vadd.f32 %v5041_v30, %v7028_v47 }
 0x21d   : > { %v7096_v7 = vadd.f32 %v5175_v24, %v6845_v13  ;;  %v5006_v50 = vpop.f32.mrb[24].mxu0  ;;  %3258 = vadd.xlane.f32.xlu1 %v3257_v19  ;;  %v3260_v31 = vsel %vm3135_vm3, %v3188_v0, 0.0  ;;  %v3542_v24 = vadd.f32 %v7028_v47, %v3541_v33  ;;  %3669 = vst.msk [vmem:[%s7045_s14 + $0x48] sm:$0xff] %vm523_vm1, %v3547_v2 }
 0x21e   : > { %3159 = vst.msk [vmem:[%s6851_s10 + $0xb8] sm:$0xff] %vm3135_vm3, %v7089_v4  ;;  %v5176_v46 = vadd.f32 %v5006_v50, %v6823_v8  ;;  %v3025_v35 = vpop.f32.mrb[25].mxu0  ;;  %3261 = vadd.xlane.f32.xlu0 %v3260_v31  ;;  %v3191_v8 = vmul.f32 %v7089_v4, %v7089_v4  ;;  %v3551_v31 = vpop.f32.mrb[43].mxu1 }
 0x21f   : > { %3158 = vst.msk [vmem:[%s6851_s10 + $0xb0] sm:$0xff] %vm3135_vm3, %v7096_v7  ;;  %v5177_v20 = vadd.f32 %v3025_v35, %v6825_v15  ;;  %v3190_v14 = vmul.f32 %v7096_v7, %v7096_v7  ;;  %v5044_v58 = vpop.f32.mrb[44].mxu1 }
 0x220   : > { %v7116_v28 = vadd.f32 %v5176_v46, %v6845_v13  ;;  %v3269_v36 = vsel %vm3135_vm3, %v3191_v8, 0.0  ;;  %3668 = vst.msk [vmem:[%s7045_s14 + $0x40] sm:$0xff] %vm523_vm1, %v3542_v24  ;;  %3671 = vst.msk [vmem:[%s7045_s14 + $0x58] sm:$0xff] %vm523_vm1, %v3557_v51  ;;  %v3567_v1 = vadd.f32 %v5044_v58, %v7028_v47 }
 0x221   : > { %v7122_v15 = vadd.f32 %v5177_v20, %v6845_v13  ;;  %v5009_v54 = vpop.f32.mrb[26].mxu0  ;;  %3264 = vadd.xlane.f32.xlu1 %v3263_v39  ;;  %v3266_v52 = vsel %vm3135_vm3, %v3190_v14, 0.0  ;;  %v3552_v20 = vadd.f32 %v7028_v47, %v3551_v31 }
 0x222   : > { %3161 = vst.msk [vmem:[%s6851_s10 + $0xc8] sm:$0xff] %vm3135_vm3, %v7116_v28  ;;  %v5178_v44 = vadd.f32 %v5009_v54, %v6827_v16  ;;  %v3035_v5 = vpop.f32.mrb[27].mxu0  ;;  %3267 = vadd.xlane.f32.xlu0 %v3266_v52  ;;  %v3193_v53 = vmul.f32 %v7116_v28, %v7116_v28  ;;  %v3561_v52 = vpop.f32.mrb[45].mxu1 }
 0x223   : > { %3160 = vst.msk [vmem:[%s6851_s10 + $0xc0] sm:$0xff] %vm3135_vm3, %v7122_v15  ;;  %v5179_v38 = vadd.f32 %v3035_v5, %v6829_v27  ;;  %v3192_v16 = vmul.f32 %v7122_v15, %v7122_v15 }
 0x224   : > { %v7141_v59 = vadd.f32 %v5178_v44, %v6845_v13  ;;  %v3275_v35 = vsel %vm3135_vm3, %v3193_v53, 0.0  ;;  %3670 = vst.msk [vmem:[%s7045_s14 + $0x50] sm:$0xff] %vm523_vm1, %v3552_v20  ;;  %3673 = vst.msk [vmem:[%s7045_s14 + $0x68] sm:$0xff] %vm523_vm1, %v3567_v1 }
 0x225   : > { %v7148_v27 = vadd.f32 %v5179_v38, %v6845_v13  ;;  %v5012_v19 = vpop.f32.mrb[28].mxu0  ;;  %3270 = vadd.xlane.f32.xlu1 %v3269_v36  ;;  %v3272_v0 = vsel %vm3135_vm3, %v3192_v16, 0.0  ;;  %v3562_v38 = vadd.f32 %v7028_v47, %v3561_v52  ;;  %v5047_v16 = vpop.f32.mrb[46].mxu1 }
 0x226   : > { %3163 = vst.msk [vmem:[%s6851_s10 + $0xd8] sm:$0xff] %vm3135_vm3, %v7141_v59  ;;  %v5180_v41 = vadd.f32 %v5012_v19, %v6831_v29  ;;  %v3045_v9 = vpop.f32.mrb[29].mxu0  ;;  %3273 = vadd.xlane.f32.xlu0 %v3272_v0  ;;  %v3195_v29 = vmul.f32 %v7141_v59, %v7141_v59  ;;  %v3571_v33 = vpop.f32.mrb[47].mxu1  ;;  %v3577_v24 = vadd.f32 %v5047_v16, %v7028_v47 }
 0x227   : > { %3162 = vst.msk [vmem:[%s6851_s10 + $0xd0] sm:$0xff] %vm3135_vm3, %v7148_v27  ;;  %v5181_v43 = vadd.f32 %v3045_v9, %v6833_v40  ;;  %v3194_v50 = vmul.f32 %v7148_v27, %v7148_v27  ;;  %v3572_v19 = vadd.f32 %v7028_v47, %v3571_v33 }
 0x228   : > { %v7168_v46 = vadd.f32 %v5180_v41, %v6845_v13  ;;  %v3281_v54 = vsel %vm3135_vm3, %v3195_v29, 0.0  ;;  %3672 = vst.msk [vmem:[%s7045_s14 + $0x60] sm:$0xff] %vm523_vm1, %v3562_v38  ;;  %3675 = vst.msk [vmem:[%s7045_s14 + $0x78] sm:$0xff] %vm523_vm1, %v3577_v24  ;;  %v5050_v41 = vpop.f32.mrb[48].mxu1 }
 0x229   : > { %v7174_v40 = vadd.f32 %v5181_v43, %v6845_v13  ;;  %v5015_v14 = vpop.f32.mrb[30].mxu0  ;;  %3276 = vadd.xlane.f32.xlu1 %v3275_v35  ;;  %v3278_v8 = vsel %vm3135_vm3, %v3194_v50, 0.0  ;;  %3674 = vst.msk [vmem:[%s7045_s14 + $0x70] sm:$0xff] %vm523_vm1, %v3572_v19  ;;  %v3581_v9 = vpop.f32.mrb[49].mxu1  ;;  %v3587_v43 = vadd.f32 %v5050_v41, %v7028_v47 }
 0x22a   : > { %3165 = vst.msk [vmem:[%s6851_s10 + $0xe8] sm:$0xff] %vm3135_vm3, %v7168_v46  ;;  %v5182_v25 = vadd.f32 %v5015_v14, %v6835_v42  ;;  %v3055_v39 = vpop.f32.mrb[31].mxu0  ;;  %3279 = vadd.xlane.f32.xlu0 %v3278_v8  ;;  %v3197_v5 = vmul.f32 %v7168_v46, %v7168_v46  ;;  %v3582_v50 = vadd.f32 %v7028_v47, %v3581_v9  ;;  %v5053_v29 = vpop.f32.mrb[50].mxu1 }
 0x22b   : > { %3164 = vst.msk [vmem:[%s6851_s10 + $0xe0] sm:$0xff] %vm3135_vm3, %v7174_v40  ;;  %v5183_v17 = vadd.f32 %v3055_v39, %v6837_v57  ;;  %v3196_v42 = vmul.f32 %v7174_v40, %v7174_v40  ;;  %v3591_v31 = vpop.f32.mrb[51].mxu1  ;;  %v3597_v35 = vadd.f32 %v5053_v29, %v7028_v47 }
 0x22c   : > { %v7193_v44 = vadd.f32 %v5182_v25, %v6845_v13  ;;  %v3287_v53 = vsel %vm3135_vm3, %v3197_v5, 0.0  ;;  %3677 = vst.msk [vmem:[%s7045_s14 + $0x88] sm:$0xff] %vm523_vm1, %v3587_v43  ;;  %3676 = vst.msk [vmem:[%s7045_s14 + $0x80] sm:$0xff] %vm523_vm1, %v3582_v50  ;;  %v3592_v51 = vadd.f32 %v7028_v47, %v3591_v31  ;;  %v5056_v20 = vpop.f32.mrb[52].mxu1 }
 0x22d   : > { %v7200_v36 = vadd.f32 %v5183_v17, %v6845_v13  ;;  %3282 = vadd.xlane.f32.xlu1 %v3281_v54  ;;  %v3284_v57 = vsel %vm3135_vm3, %v3196_v42, 0.0  ;;  %3679 = vst.msk [vmem:[%s7045_s14 + $0x98] sm:$0xff] %vm523_vm1, %v3597_v35  ;;  %v3601_v14 = vpop.f32.mrb[53].mxu1  ;;  %v3607_v8 = vadd.f32 %v5056_v20, %v7028_v47 }
 0x22e   : > { %3167 = vst.msk [vmem:[%s6851_s10 + $0xf8] sm:$0xff] %vm3135_vm3, %v7193_v44  ;;  %3285 = vadd.xlane.f32.xlu0 %v3284_v57  ;;  %v3199_v2 = vmul.f32 %v7193_v44, %v7193_v44  ;;  %v3602_v25 = vadd.f32 %v7028_v47, %v3601_v14  ;;  %v5059_v39 = vpop.f32.mrb[54].mxu1 }
 0x22f   : > { %3166 = vst.msk [vmem:[%s6851_s10 + $0xf0] sm:$0xff] %vm3135_vm3, %v7200_v36  ;;  %v3198_v13 = vmul.f32 %v7200_v36, %v7200_v36  ;;  %v3611_v58 = vpop.f32.mrb[55].mxu1  ;;  %v3617_v17 = vadd.f32 %v5059_v39, %v7028_v47 }
 0x230   : > { %v3293_v30 = vsel %vm3135_vm3, %v3199_v2, 0.0  ;;  %3678 = vst.msk [vmem:[%s7045_s14 + $0x90] sm:$0xff] %vm523_vm1, %v3592_v51  ;;  %3681 = vst.msk [vmem:[%s7045_s14 + $0xa8] sm:$0xff] %vm523_vm1, %v3607_v8  ;;  %v3612_v54 = vadd.f32 %v7028_v47, %v3611_v58  ;;  %v5062_v42 = vpop.f32.mrb[56].mxu1 }
 0x231   : > { %3288 = vadd.xlane.f32.xlu1 %v3287_v53  ;;  %v3290_v0 = vsel %vm3135_vm3, %v3198_v13, 0.0  ;;  %3680 = vst.msk [vmem:[%s7045_s14 + $0xa0] sm:$0xff] %vm523_vm1, %v3602_v25  ;;  %3683 = vst.msk [vmem:[%s7045_s14 + $0xb8] sm:$0xff] %vm523_vm1, %v3617_v17  ;;  %v3621_v52 = vpop.f32.mrb[57].mxu1  ;;  %v3627_v5 = vadd.f32 %v5062_v42, %v7028_v47 }
 0x232   : > { %3291 = vadd.xlane.f32.xlu0 %v3290_v0  ;;  %3682 = vst.msk [vmem:[%s7045_s14 + $0xb0] sm:$0xff] %vm523_vm1, %v3612_v54  ;;  %v3622_v1 = vadd.f32 %v7028_v47, %v3621_v52  ;;  %v5065_v38 = vpop.f32.mrb[58].mxu1 }
 0x233   : > { %3685 = vst.msk [vmem:[%s7045_s14 + $0xc8] sm:$0xff] %vm523_vm1, %v3627_v5  ;;  %v3631_v57 = vpop.f32.mrb[59].mxu1  ;;  %v3637_v16 = vadd.f32 %v5065_v38, %v7028_v47 }
 0x234   : > { %3684 = vst.msk [vmem:[%s7045_s14 + $0xc0] sm:$0xff] %vm523_vm1, %v3622_v1  ;;  %v3632_v13 = vadd.f32 %v7028_v47, %v3631_v57  ;;  %v5068_v33 = vpop.f32.mrb[60].mxu1 }
 0x235   : > { %3294 = vadd.xlane.f32.xlu1 %v3293_v30  ;;  %3687 = vst.msk [vmem:[%s7045_s14 + $0xd8] sm:$0xff] %vm523_vm1, %v3637_v16  ;;  %v3641_v53 = vpop.f32.mrb[61].mxu1  ;;  %v3647_v2 = vadd.f32 %v5068_v33, %v7028_v47 }
 0x236   : > { %3686 = vst.msk [vmem:[%s7045_s14 + $0xd0] sm:$0xff] %vm523_vm1, %v3632_v13  ;;  %v3642_v24 = vadd.f32 %v7028_v47, %v3641_v53  ;;  %v5071_v19 = vpop.f32.mrb[62].mxu1 }
 0x237   : > { %3689 = vst.msk [vmem:[%s7045_s14 + $0xe8] sm:$0xff] %vm523_vm1, %v3647_v2  ;;  %v3651_v0 = vpop.f32.mrb[63].mxu1  ;;  %v3657_v41 = vadd.f32 %v5071_v19, %v7028_v47 }
 0x238   : > { %3688 = vst.msk [vmem:[%s7045_s14 + $0xe0] sm:$0xff] %vm523_vm1, %v3642_v24  ;;  %v3652_v9 = vadd.f32 %v7028_v47, %v3651_v0 }
 0x239   : > { %3691 = vst.msk [vmem:[%s7045_s14 + $0xf8] sm:$0xff] %vm523_vm1, %v3657_v41 }
 0x23a   : > { %3690 = vst.msk [vmem:[%s7045_s14 + $0xf0] sm:$0xff] %vm523_vm1, %v3652_v9 }
 0x282   : > { %v3205_v30 = vpop.xlane.xlu0 %3204 }
 0x283   : > { %v3297_v43 = vmax.f32 %v3205_v30, 2.5e-09 }
 0x285   : > { %5417 = vrsqrt.f32 %v3297_v43 }
 0x286   : > { %v3202_v50 = vpop.xlane.xlu0 %3201  ;;  %v3211_v29 = vpop.xlane.xlu1 %3210 }
 0x287   : > { %v3296_v31 = vmax.f32 %v3202_v50, 2.5e-09  ;;  %v3299_v35 = vmax.f32 %v3211_v29, 2.5e-09 }
 0x289   : > { %5419 = vrsqrt.f32 %v3296_v31 }
 0x28a   : > { %5421 = vrsqrt.f32 %v3299_v35  ;;  %v3208_v51 = vpop.xlane.xlu1 %3207 }
 0x28b   : > { %v3298_v20 = vmax.f32 %v3208_v51, 2.5e-09  ;;  %v3214_v14 = vpop.xlane.xlu0 %3213 }
 0x28c   : > { %v3300_v8 = vmax.f32 %v3214_v14, 2.5e-09 }
 0x28d   : > { %5423 = vrsqrt.f32 %v3298_v20 }
 0x28e   : > { %5425 = vrsqrt.f32 %v3300_v8  ;;  %v3217_v47 = vpop.xlane.xlu1 %3216 }
 0x28f   : > { %v5418_v25 = vpop.eup %5417  ;;  %v3301_v39 = vmax.f32 %v3217_v47, 2.5e-09  ;;  %v3220_v58 = vpop.xlane.xlu0 %3219 }
 0x290   : > { %v3361_v17 = vmul.f32 %v5418_v25, %v6854_v21  ;;  %v3302_v54 = vmax.f32 %v3220_v58, 2.5e-09 }
 0x291   : > { %5427 = vrsqrt.f32 %v3301_v39 }
 0x292   : > { %3393 = vst.msk [vmem:[%s7278_s17 + $0x8] sm:$0xff] %vm3135_vm3, %v3361_v17  ;;  %5429 = vrsqrt.f32 %v3302_v54  ;;  %v3223_v42 = vpop.xlane.xlu1 %3222 }
 0x293   : > { %v5420_v52 = vpop.eup %5419  ;;  %v3303_v5 = vmax.f32 %v3223_v42, 2.5e-09  ;;  %v3226_v1 = vpop.xlane.xlu0 %3225 }
 0x294   : > { %v5422_v38 = vpop.eup %5421  ;;  %v3360_v57 = vmul.f32 %v5420_v52, %v6857_v10  ;;  %v3304_v16 = vmax.f32 %v3226_v1, 2.5e-09 }
 0x295   : > { %v3363_v13 = vmul.f32 %v5422_v38, %v6868_v60  ;;  %5431 = vrsqrt.f32 %v3303_v5 }
 0x296   : > { %3392 = vst.msk [vmem:[%s7278_s17] sm:$0xff] %vm3135_vm3, %v3360_v57  ;;  %5433 = vrsqrt.f32 %v3304_v16  ;;  %v3229_v21 = vpop.xlane.xlu1 %3228 }
 0x297   : > { %v5424_v33 = vpop.eup %5423  ;;  %3395 = vst.msk [vmem:[%s7278_s17 + $0x18] sm:$0xff] %vm3135_vm3, %v3363_v13  ;;  %v3305_v53 = vmax.f32 %v3229_v21, 2.5e-09  ;;  %v3232_v2 = vpop.xlane.xlu0 %3231 }
 0x298   : > { %v5426_v24 = vpop.eup %5425  ;;  %v3362_v19 = vmul.f32 %v5424_v33, %v6874_v49  ;;  %v3306_v10 = vmax.f32 %v3232_v2, 2.5e-09 }
 0x299   : > { %v3364_v0 = vmul.f32 %v5426_v24, %v6892_v55  ;;  %5435 = vrsqrt.f32 %v3305_v53 }
 0x29a   : > { %3394 = vst.msk [vmem:[%s7278_s17 + $0x10] sm:$0xff] %vm3135_vm3, %v3362_v19  ;;  %5437 = vrsqrt.f32 %v3306_v10  ;;  %v3235_v60 = vpop.xlane.xlu1 %3234 }
 0x29b   : > { %v5428_v41 = vpop.eup %5427  ;;  %3396 = vst.msk [vmem:[%s7278_s17 + $0x20] sm:$0xff] %vm3135_vm3, %v3364_v0  ;;  %v3307_v9 = vmax.f32 %v3235_v60, 2.5e-09  ;;  %v3238_v30 = vpop.xlane.xlu0 %3237 }
 0x29c   : > { %v5430_v43 = vpop.eup %5429  ;;  %v3365_v50 = vmul.f32 %v5428_v41, %v6885_v56  ;;  %v3308_v49 = vmax.f32 %v3238_v30, 2.5e-09 }
 0x29d   : > { %v3366_v29 = vmul.f32 %v5430_v43, %v6911_v11  ;;  %5439 = vrsqrt.f32 %v3307_v9 }
 0x29e   : > { %3397 = vst.msk [vmem:[%s7278_s17 + $0x28] sm:$0xff] %vm3135_vm3, %v3365_v50  ;;  %5441 = vrsqrt.f32 %v3308_v49  ;;  %v3241_v55 = vpop.xlane.xlu1 %3240 }
 0x29f   : > { %v5432_v31 = vpop.eup %5431  ;;  %3398 = vst.msk [vmem:[%s7278_s17 + $0x30] sm:$0xff] %vm3135_vm3, %v3366_v29  ;;  %v3309_v35 = vmax.f32 %v3241_v55, 2.5e-09  ;;  %v3244_v51 = vpop.xlane.xlu0 %3243 }
 0x2a0   : > { %v5434_v20 = vpop.eup %5433  ;;  %v3367_v14 = vmul.f32 %v5432_v31, %v6905_v12  ;;  %v3310_v56 = vmax.f32 %v3244_v51, 2.5e-09 }
 0x2a1   : > { %v3368_v8 = vmul.f32 %v5434_v20, %v6931_v3  ;;  %5443 = vrsqrt.f32 %v3309_v35 }
 0x2a2   : > { %3399 = vst.msk [vmem:[%s7278_s17 + $0x38] sm:$0xff] %vm3135_vm3, %v3367_v14  ;;  %5445 = vrsqrt.f32 %v3310_v56  ;;  %v3247_v11 = vpop.xlane.xlu1 %3246 }
 0x2a3   : > { %v5436_v47 = vpop.eup %5435  ;;  %3400 = vst.msk [vmem:[%s7278_s17 + $0x40] sm:$0xff] %vm3135_vm3, %v3368_v8  ;;  %v3311_v25 = vmax.f32 %v3247_v11, 2.5e-09  ;;  %v3250_v39 = vpop.xlane.xlu0 %3249 }
 0x2a4   : > { %v5438_v58 = vpop.eup %5437  ;;  %v3369_v17 = vmul.f32 %v5436_v47, %v6925_v18  ;;  %v3312_v12 = vmax.f32 %v3250_v39, 2.5e-09 }
 0x2a5   : > { %v3370_v54 = vmul.f32 %v5438_v58, %v6951_v26  ;;  %5447 = vrsqrt.f32 %v3311_v25 }
 0x2a6   : > { %3401 = vst.msk [vmem:[%s7278_s17 + $0x48] sm:$0xff] %vm3135_vm3, %v3369_v17  ;;  %5449 = vrsqrt.f32 %v3312_v12  ;;  %v3253_v3 = vpop.xlane.xlu1 %3252 }
 0x2a7   : > { %v5440_v42 = vpop.eup %5439  ;;  %3402 = vst.msk [vmem:[%s7278_s17 + $0x50] sm:$0xff] %vm3135_vm3, %v3370_v54  ;;  %v3313_v52 = vmax.f32 %v3253_v3, 2.5e-09  ;;  %v3256_v5 = vpop.xlane.xlu0 %3255 }
 0x2a8   : > { %v5442_v1 = vpop.eup %5441  ;;  %v3371_v38 = vmul.f32 %v5440_v42, %v6945_v37  ;;  %v3314_v18 = vmax.f32 %v3256_v5, 2.5e-09 }
 0x2a9   : > { %v3372_v57 = vmul.f32 %v5442_v1, %v6971_v61  ;;  %5451 = vrsqrt.f32 %v3313_v52 }
 0x2aa   : > { %3403 = vst.msk [vmem:[%s7278_s17 + $0x58] sm:$0xff] %vm3135_vm3, %v3371_v38  ;;  %5453 = vrsqrt.f32 %v3314_v18  ;;  %v3259_v26 = vpop.xlane.xlu1 %3258 }
 0x2ab   : > { %v5444_v16 = vpop.eup %5443  ;;  %3404 = vst.msk [vmem:[%s7278_s17 + $0x60] sm:$0xff] %vm3135_vm3, %v3372_v57  ;;  %v3315_v13 = vmax.f32 %v3259_v26, 2.5e-09  ;;  %v3262_v21 = vpop.xlane.xlu0 %3261 }
 0x2ac   : > { %v5446_v33 = vpop.eup %5445  ;;  %v3373_v53 = vmul.f32 %v5444_v16, %v6965_v23  ;;  %v3316_v37 = vmax.f32 %v3262_v21, 2.5e-09 }
 0x2ad   : > { %v3374_v2 = vmul.f32 %v5446_v33, %v6991_v32  ;;  %5455 = vrsqrt.f32 %v3315_v13 }
 0x2ae   : > { %3405 = vst.msk [vmem:[%s7278_s17 + $0x68] sm:$0xff] %vm3135_vm3, %v3373_v53  ;;  %5457 = vrsqrt.f32 %v3316_v37  ;;  %v3265_v61 = vpop.xlane.xlu1 %3264 }
 0x2af   : > { %v5448_v24 = vpop.eup %5447  ;;  %3406 = vst.msk [vmem:[%s7278_s17 + $0x70] sm:$0xff] %vm3135_vm3, %v3374_v2  ;;  %v3317_v19 = vmax.f32 %v3265_v61, 2.5e-09  ;;  %v3268_v10 = vpop.xlane.xlu0 %3267 }
 0x2b0   : > { %v5450_v0 = vpop.eup %5449  ;;  %v3375_v60 = vmul.f32 %v5448_v24, %v6985_v22  ;;  %v3318_v23 = vmax.f32 %v3268_v10, 2.5e-09 }
 0x2b1   : > { %v3376_v41 = vmul.f32 %v5450_v0, %v7011_v45  ;;  %5459 = vrsqrt.f32 %v3317_v19 }
 0x2b2   : > { %3407 = vst.msk [vmem:[%s7278_s17 + $0x78] sm:$0xff] %vm3135_vm3, %v3375_v60  ;;  %5461 = vrsqrt.f32 %v3318_v23  ;;  %v3271_v32 = vpop.xlane.xlu1 %3270 }
 0x2b3   : > { %v5452_v9 = vpop.eup %5451  ;;  %3408 = vst.msk [vmem:[%s7278_s17 + $0x80] sm:$0xff] %vm3135_vm3, %v3376_v41  ;;  %v3319_v30 = vmax.f32 %v3271_v32, 2.5e-09  ;;  %v3274_v43 = vpop.xlane.xlu0 %3273 }
 0x2b4   : > { %v5454_v50 = vpop.eup %5453  ;;  %v3377_v49 = vmul.f32 %v5452_v9, %v7007_v62  ;;  %v3320_v22 = vmax.f32 %v3274_v43, 2.5e-09 }
 0x2b5   : > { %v3378_v29 = vmul.f32 %v5454_v50, %v7038_v6  ;;  %5463 = vrsqrt.f32 %v3319_v30 }
 0x2b6   : > { %3409 = vst.msk [vmem:[%s7278_s17 + $0x88] sm:$0xff] %vm3135_vm3, %v3377_v49  ;;  %5465 = vrsqrt.f32 %v3320_v22  ;;  %v3277_v45 = vpop.xlane.xlu1 %3276 }
 0x2b7   : > { %v5456_v55 = vpop.eup %5455  ;;  %3410 = vst.msk [vmem:[%s7278_s17 + $0x90] sm:$0xff] %vm3135_vm3, %v3378_v29  ;;  %v3321_v31 = vmax.f32 %v3277_v45, 2.5e-09  ;;  %v3280_v35 = vpop.xlane.xlu0 %3279 }
 0x2b8   : > { %v5458_v51 = vpop.eup %5457  ;;  %v3379_v20 = vmul.f32 %v5456_v55, %v7031_v48  ;;  %v3322_v62 = vmax.f32 %v3280_v35, 2.5e-09 }
 0x2b9   : > { %v3380_v14 = vmul.f32 %v5458_v51, %v7070_v63  ;;  %5467 = vrsqrt.f32 %v3321_v31 }
 0x2ba   : > { %3411 = vst.msk [vmem:[%s7278_s17 + $0x98] sm:$0xff] %vm3135_vm3, %v3379_v20  ;;  %5469 = vrsqrt.f32 %v3322_v62  ;;  %v3283_v6 = vpop.xlane.xlu1 %3282 }
 0x2bb   : > { %v5460_v56 = vpop.eup %5459  ;;  %3412 = vst.msk [vmem:[%s7278_s17 + $0xa0] sm:$0xff] %vm3135_vm3, %v3380_v14  ;;  %v3323_v8 = vmax.f32 %v3283_v6, 2.5e-09  ;;  %v3286_v11 = vpop.xlane.xlu0 %3285 }
 0x2bc   : > { %v5462_v47 = vpop.eup %5461  ;;  %v3381_v25 = vmul.f32 %v5460_v56, %v7064_v34  ;;  %v3324_v48 = vmax.f32 %v3286_v11, 2.5e-09 }
 0x2bd   : > { %v3382_v39 = vmul.f32 %v5462_v47, %v7096_v7  ;;  %5471 = vrsqrt.f32 %v3323_v8 }
 0x2be   : > { %3413 = vst.msk [vmem:[%s7278_s17 + $0xa8] sm:$0xff] %vm3135_vm3, %v3381_v25  ;;  %5473 = vrsqrt.f32 %v3324_v48  ;;  %v3289_v63 = vpop.xlane.xlu1 %3288 }
 0x2bf   : > { %v5464_v58 = vpop.eup %5463  ;;  %3414 = vst.msk [vmem:[%s7278_s17 + $0xb0] sm:$0xff] %vm3135_vm3, %v3382_v39  ;;  %v3325_v17 = vmax.f32 %v3289_v63, 2.5e-09  ;;  %v3292_v12 = vpop.xlane.xlu0 %3291 }
 0x2c0   : > { %v5466_v54 = vpop.eup %5465  ;;  %v3383_v3 = vmul.f32 %v5464_v58, %v7089_v4  ;;  %v3326_v34 = vmax.f32 %v3292_v12, 2.5e-09 }
 0x2c1   : > { %v3384_v42 = vmul.f32 %v5466_v54, %v7122_v15  ;;  %5475 = vrsqrt.f32 %v3325_v17 }
 0x2c2   : > { %3415 = vst.msk [vmem:[%s7278_s17 + $0xb8] sm:$0xff] %vm3135_vm3, %v3383_v3  ;;  %5477 = vrsqrt.f32 %v3326_v34  ;;  %v3295_v7 = vpop.xlane.xlu1 %3294 }
 0x2c3   : > { %v5468_v52 = vpop.eup %5467  ;;  %3416 = vst.msk [vmem:[%s7278_s17 + $0xc0] sm:$0xff] %vm3135_vm3, %v3384_v42  ;;  %v3327_v5 = vmax.f32 %v3295_v7, 2.5e-09 }
 0x2c4   : > { %v5470_v1 = vpop.eup %5469  ;;  %v3385_v38 = vmul.f32 %v5468_v52, %v7116_v28 }
 0x2c5   : > { %v3386_v4 = vmul.f32 %v5470_v1, %v7148_v27  ;;  %5479 = vrsqrt.f32 %v3327_v5 }
 0x2c6   : > { %3417 = vst.msk [vmem:[%s7278_s17 + $0xc8] sm:$0xff] %vm3135_vm3, %v3385_v38 }
 0x2c7   : > { %v5472_v15 = vpop.eup %5471  ;;  %3418 = vst.msk [vmem:[%s7278_s17 + $0xd0] sm:$0xff] %vm3135_vm3, %v3386_v4 }
 0x2c8   : > { %v5474_v18 = vpop.eup %5473  ;;  %v3387_v57 = vmul.f32 %v5472_v15, %v7141_v59 }
 0x2c9   : > { %v3388_v26 = vmul.f32 %v5474_v18, %v7174_v40 }
 0x2ca   : > { %3419 = vst.msk [vmem:[%s7278_s17 + $0xd8] sm:$0xff] %vm3135_vm3, %v3387_v57 }
 0x2cb   : > { %v5476_v16 = vpop.eup %5475  ;;  %3420 = vst.msk [vmem:[%s7278_s17 + $0xe0] sm:$0xff] %vm3135_vm3, %v3388_v26 }
 0x2cc   : > { %v5478_v28 = vpop.eup %5477  ;;  %v3389_v27 = vmul.f32 %v5476_v16, %v7168_v46 }
 0x2cd   : > { %v3390_v13 = vmul.f32 %v5478_v28, %v7200_v36 }
 0x2ce   : > { %3421 = vst.msk [vmem:[%s7278_s17 + $0xe8] sm:$0xff] %vm3135_vm3, %v3389_v27 }
 0x2cf   : > { %v5480_v21 = vpop.eup %5479  ;;  %3422 = vst.msk [vmem:[%s7278_s17 + $0xf0] sm:$0xff] %vm3135_vm3, %v3390_v13 }
 0x2d0   : > { %v3391_v33 = vmul.f32 %v5480_v21, %v7193_v44 }
 0x2d2   : > { %3423 = vst.msk [vmem:[%s7278_s17 + $0xf8] sm:$0xff] %vm3135_vm3, %v3391_v33 }
 0x2d3 PF: > { %s18_s24 = sadd.s32 1, %s5487_s24  }
 0x2d4   : > { %p15_p4 = scmp.ge.s32.totalorder %s18_s24, 4  }
 0x2d6   :  { %17 = sbr.rel (!%p15_p4) target bundleno = 1 (0x1), region = 94 }

</bundles_post_ra>
